<compile_context>
chip_gen: v5e
topology: v5e:2x2
jax: 0.10.0
libtpu: 0.0.40
codegen_flags: <defaults>
</compile_context>

<pallas_src>
import jax
import jax.numpy as jnp
from jax import lax
from jax.experimental import pallas as pl
from jax.experimental.pallas import tpu as pltpu


def lstm_kernel(x_ref, w_ih_t_ref, w_hh_t_ref, b_ref, y_ref):
    # x_ref:      (B, T, H)   batch-first input (module layout, no transpose)
    # w_ih_t_ref: (H, 4H)     transposed weight_ih (PyTorch gate order i,f,g,o)
    # w_hh_t_ref: (H, 4H)     transposed weight_hh
    # b_ref:      (1, 4H)     bias_ih + bias_hh
    # y_ref:      (T, B, H)   time-major hidden states (single bulk store)
    B, T, H = x_ref.shape
    w_hh_t = w_hh_t_ref[...]

    # ---- Hoisted input projection (+ bias) for ALL timesteps at once:
    # one (B*T, H) x (H, 4H) matmul off the recurrent critical path.
    x2d = x_ref[...].reshape(B * T, H)
    zx = (jnp.dot(x2d, w_ih_t_ref[...], preferred_element_type=jnp.float32)
          + b_ref[...])                                    # (B*T, 4H)
    zx = zx.reshape(B, T, 4 * H)

    # ---- Recurrence: fully unrolled; only h @ w_hh_t per serial step.
    h = jnp.zeros((B, H), jnp.float32)
    c = jnp.zeros((B, H), jnp.float32)
    hs = []
    for t in range(T):                                     # static unroll
        z = zx[:, t, :] + jnp.dot(h, w_hh_t,
                                  preferred_element_type=jnp.float32)  # (B,4H)
        i = jax.nn.sigmoid(z[:, 0:H])
        f = jax.nn.sigmoid(z[:, H:2 * H])
        g = jnp.tanh(z[:, 2 * H:3 * H])
        o = jax.nn.sigmoid(z[:, 3 * H:4 * H])
        c = f * c + i * g
        h = o * jnp.tanh(c)
        hs.append(h)

    # ---- One coalesced store of all T hidden states (replaces T masked
    # per-step partial stores).
    y_ref[...] = jnp.stack(hs, axis=0).astype(y_ref.dtype)  # (T, B, H)


def blocklstm_forward(x, w_ih, w_hh, b_ih, b_hh):
    """x: (B, T, H) float32, batch_first like PyTorch.  Returns (B, T, H)."""
    B, T, H = x.shape
    w_ih_t = jnp.transpose(w_ih)                  # (H, 4H)
    w_hh_t = jnp.transpose(w_hh)                  # (H, 4H)
    bias = (b_ih + b_hh).reshape(1, 4 * H)        # (1, 4H)

    # Grid-less call: everything (x, weights, y) is a few KiB and fully
    # VMEM-resident on all of v5e/v6e/v7x.  If T/B/H grow, switch to a grid
    # over batch ("parallel", to use both v7x TensorCores) with BlockSpec
    # pipelining along time.
    y_tbh = pl.pallas_call(
        lstm_kernel,
        out_shape=jax.ShapeDtypeStruct((T, B, H), jnp.float32),
        in_specs=[pl.BlockSpec(memory_space=pltpu.MemorySpace.VMEM)] * 4,
        out_specs=pl.BlockSpec(memory_space=pltpu.MemorySpace.VMEM),
    )(x, w_ih_t, w_hh_t, bias)

    y = jnp.transpose(y_tbh, (1, 0, 2))           # back to (B, T, H)
    # nn.Dropout in eval mode is the identity; no scaling applied.
    # TODO(synk): training-mode dropout (pltpu.prng_seed + mask + 1/(1-p) scale).
    return y


def lstm_reference(x, w_ih, w_hh, b_ih, b_hh):
    """Pure-JAX reference matching torch.nn.LSTM (single layer, unidirectional)."""
    B, T, H = x.shape

    def step(carry, x_t):
        h, c = carry
        z = x_t @ w_ih.T + h @ w_hh.T + b_ih + b_hh
        i = jax.nn.sigmoid(z[:, 0:H])
        f = jax.nn.sigmoid(z[:, H:2 * H])
        g = jnp.tanh(z[:, 2 * H:3 * H])
        o = jax.nn.sigmoid(z[:, 3 * H:4 * H])
        c = f * c + i * g
        h = o * jnp.tanh(c)
        return (h, c), h

    init = (jnp.zeros((B, H), jnp.float32), jnp.zeros((B, H), jnp.float32))
    _, ys = lax.scan(step, init, jnp.transpose(x, (1, 0, 2)))
    return jnp.transpose(ys, (1, 0, 2))


if __name__ == "__main__":
    # Blocklstm(seq_len=32, drop_rate=0.1): input (batch, time, seq_len)
    B, T, H = 2, 8, 32
    key = jax.random.PRNGKey(0)
    kx, k1, k2, k3, k4 = jax.random.split(key, 5)

    x = jax.random.normal(kx, (B, T, H), dtype=jnp.float32)

    # Deterministic PyTorch-style init: U(-1/sqrt(H), 1/sqrt(H))
    bound = 1.0 / (H ** 0.5)
    w_ih = jax.random.uniform(k1, (4 * H, H), jnp.float32, -bound, bound)
    w_hh = jax.random.uniform(k2, (4 * H, H), jnp.float32, -bound, bound)
    b_ih = jax.random.uniform(k3, (4 * H,), jnp.float32, -bound, bound)
    b_hh = jax.random.uniform(k4, (4 * H,), jnp.float32, -bound, bound)

    y = blocklstm_forward(x, w_ih, w_hh, b_ih, b_hh)
    y = jax.block_until_ready(y)

    y_ref = lstm_reference(x, w_ih, w_hh, b_ih, b_hh)
    assert y.shape == (B, T, H)
    assert jnp.allclose(y, y_ref, atol=1e-5, rtol=1e-5), (
        float(jnp.max(jnp.abs(y - y_ref))))

    print("KERNEL_OK")
</pallas_src>

<mosaic_0001>
module attributes {stable_mosaic.version = 11 : i64} {
  func.func @lstm_kernel(%arg0: memref<2x8x32xf32, #tpu.memory_space<vmem>>, %arg1: memref<32x128xf32, #tpu.memory_space<vmem>>, %arg2: memref<32x128xf32, #tpu.memory_space<vmem>>, %arg3: memref<1x128xf32, #tpu.memory_space<vmem>>, %arg4: memref<8x2x32xf32, #tpu.memory_space<vmem>>) attributes {dimension_semantics = [], scalar_prefetch = 0 : i64, scratch_operands = 0 : i64, tpu.core_type = #tpu.core_type<tc>} {
    %c0 = arith.constant 0 : index
    %c0_0 = arith.constant 0 : index
    %0 = vector.load %arg2[%c0, %c0_0] : memref<32x128xf32, #tpu.memory_space<vmem>>, vector<32x128xf32>
    %c0_1 = arith.constant 0 : index
    %c0_2 = arith.constant 0 : index
    %c0_3 = arith.constant 0 : index
    %1 = vector.load %arg0[%c0_1, %c0_2, %c0_3] : memref<2x8x32xf32, #tpu.memory_space<vmem>>, vector<2x8x32xf32>
    %2 = vector.shape_cast %1 : vector<2x8x32xf32> to vector<16x32xf32>
    %c0_4 = arith.constant 0 : index
    %c0_5 = arith.constant 0 : index
    %3 = vector.load %arg1[%c0_4, %c0_5] : memref<32x128xf32, #tpu.memory_space<vmem>>, vector<32x128xf32>
    %cst = arith.constant dense<0.000000e+00> : vector<16x128xf32>
    %4 = tpu.matmul %2, %3, %cst {dimension_numbers = #tpu.dot_dimension_numbers<[1], [0], [0], [1], [0, 0, 1, 1], [], []>} : vector<16x32xf32>, vector<32x128xf32>, vector<16x128xf32> -> vector<16x128xf32>
    %c0_6 = arith.constant 0 : index
    %c0_7 = arith.constant 0 : index
    %5 = vector.load %arg3[%c0_6, %c0_7] : memref<1x128xf32, #tpu.memory_space<vmem>>, vector<1x128xf32>
    %6 = vector.broadcast %5 : vector<1x128xf32> to vector<16x128xf32>
    %7 = arith.addf %4, %6 : vector<16x128xf32>
    %8 = vector.shape_cast %7 : vector<16x128xf32> to vector<2x8x128xf32>
    %cst_8 = arith.constant 0.000000e+00 : f32
    %9 = vector.broadcast %cst_8 : f32 to vector<2x32xf32>
    %cst_9 = arith.constant 0.000000e+00 : f32
    %10 = vector.broadcast %cst_9 : f32 to vector<2x32xf32>
    %11 = vector.extract_strided_slice %8 {offsets = [0, 0, 0], sizes = [2, 1, 128], strides = [1, 1, 1]} : vector<2x8x128xf32> to vector<2x1x128xf32>
    %12 = vector.shape_cast %11 : vector<2x1x128xf32> to vector<2x128xf32>
    %cst_10 = arith.constant dense<0.000000e+00> : vector<2x128xf32>
    %13 = tpu.matmul %9, %0, %cst_10 {dimension_numbers = #tpu.dot_dimension_numbers<[1], [0], [0], [1], [0, 0, 1, 1], [], []>} : vector<2x32xf32>, vector<32x128xf32>, vector<2x128xf32> -> vector<2x128xf32>
    %14 = arith.addf %12, %13 : vector<2x128xf32>
    %15 = vector.extract_strided_slice %14 {offsets = [0, 0], sizes = [2, 32], strides = [1, 1]} : vector<2x128xf32> to vector<2x32xf32>
    %16 = arith.negf %15 : vector<2x32xf32>
    %17 = math.exp %16 : vector<2x32xf32>
    %cst_11 = arith.constant 1.000000e+00 : f32
    %18 = vector.broadcast %cst_11 : f32 to vector<2x32xf32>
    %19 = arith.addf %18, %17 : vector<2x32xf32>
    %20 = arith.divf %18, %19 : vector<2x32xf32>
    %21 = vector.extract_strided_slice %14 {offsets = [0, 32], sizes = [2, 32], strides = [1, 1]} : vector<2x128xf32> to vector<2x32xf32>
    %22 = arith.negf %21 : vector<2x32xf32>
    %23 = math.exp %22 : vector<2x32xf32>
    %cst_12 = arith.constant 1.000000e+00 : f32
    %24 = vector.broadcast %cst_12 : f32 to vector<2x32xf32>
    %25 = arith.addf %24, %23 : vector<2x32xf32>
    %26 = arith.divf %24, %25 : vector<2x32xf32>
    %27 = vector.extract_strided_slice %14 {offsets = [0, 64], sizes = [2, 32], strides = [1, 1]} : vector<2x128xf32> to vector<2x32xf32>
    %28 = math.tanh %27 : vector<2x32xf32>
    %29 = vector.extract_strided_slice %14 {offsets = [0, 96], sizes = [2, 32], strides = [1, 1]} : vector<2x128xf32> to vector<2x32xf32>
    %30 = arith.negf %29 : vector<2x32xf32>
    %31 = math.exp %30 : vector<2x32xf32>
    %cst_13 = arith.constant 1.000000e+00 : f32
    %32 = vector.broadcast %cst_13 : f32 to vector<2x32xf32>
    %33 = arith.addf %32, %31 : vector<2x32xf32>
    %34 = arith.divf %32, %33 : vector<2x32xf32>
    %35 = arith.mulf %26, %10 : vector<2x32xf32>
    %36 = arith.mulf %20, %28 : vector<2x32xf32>
    %37 = arith.addf %35, %36 : vector<2x32xf32>
    %38 = math.tanh %37 : vector<2x32xf32>
    %39 = arith.mulf %34, %38 : vector<2x32xf32>
    %40 = vector.extract_strided_slice %8 {offsets = [0, 1, 0], sizes = [2, 1, 128], strides = [1, 1, 1]} : vector<2x8x128xf32> to vector<2x1x128xf32>
    %41 = vector.shape_cast %40 : vector<2x1x128xf32> to vector<2x128xf32>
    %cst_14 = arith.constant dense<0.000000e+00> : vector<2x128xf32>
    %42 = tpu.matmul %39, %0, %cst_14 {dimension_numbers = #tpu.dot_dimension_numbers<[1], [0], [0], [1], [0, 0, 1, 1], [], []>} : vector<2x32xf32>, vector<32x128xf32>, vector<2x128xf32> -> vector<2x128xf32>
    %43 = arith.addf %41, %42 : vector<2x128xf32>
    %44 = vector.extract_strided_slice %43 {offsets = [0, 0], sizes = [2, 32], strides = [1, 1]} : vector<2x128xf32> to vector<2x32xf32>
    %45 = arith.negf %44 : vector<2x32xf32>
    %46 = math.exp %45 : vector<2x32xf32>
    %cst_15 = arith.constant 1.000000e+00 : f32
    %47 = vector.broadcast %cst_15 : f32 to vector<2x32xf32>
    %48 = arith.addf %47, %46 : vector<2x32xf32>
    %49 = arith.divf %47, %48 : vector<2x32xf32>
    %50 = vector.extract_strided_slice %43 {offsets = [0, 32], sizes = [2, 32], strides = [1, 1]} : vector<2x128xf32> to vector<2x32xf32>
    %51 = arith.negf %50 : vector<2x32xf32>
    %52 = math.exp %51 : vector<2x32xf32>
    %cst_16 = arith.constant 1.000000e+00 : f32
    %53 = vector.broadcast %cst_16 : f32 to vector<2x32xf32>
    %54 = arith.addf %53, %52 : vector<2x32xf32>
    %55 = arith.divf %53, %54 : vector<2x32xf32>
    %56 = vector.extract_strided_slice %43 {offsets = [0, 64], sizes = [2, 32], strides = [1, 1]} : vector<2x128xf32> to vector<2x32xf32>
    %57 = math.tanh %56 : vector<2x32xf32>
    %58 = vector.extract_strided_slice %43 {offsets = [0, 96], sizes = [2, 32], strides = [1, 1]} : vector<2x128xf32> to vector<2x32xf32>
    %59 = arith.negf %58 : vector<2x32xf32>
    %60 = math.exp %59 : vector<2x32xf32>
    %cst_17 = arith.constant 1.000000e+00 : f32
    %61 = vector.broadcast %cst_17 : f32 to vector<2x32xf32>
    %62 = arith.addf %61, %60 : vector<2x32xf32>
    %63 = arith.divf %61, %62 : vector<2x32xf32>
    %64 = arith.mulf %55, %37 : vector<2x32xf32>
    %65 = arith.mulf %49, %57 : vector<2x32xf32>
    %66 = arith.addf %64, %65 : vector<2x32xf32>
    %67 = math.tanh %66 : vector<2x32xf32>
    %68 = arith.mulf %63, %67 : vector<2x32xf32>
    %69 = vector.extract_strided_slice %8 {offsets = [0, 2, 0], sizes = [2, 1, 128], strides = [1, 1, 1]} : vector<2x8x128xf32> to vector<2x1x128xf32>
    %70 = vector.shape_cast %69 : vector<2x1x128xf32> to vector<2x128xf32>
    %cst_18 = arith.constant dense<0.000000e+00> : vector<2x128xf32>
    %71 = tpu.matmul %68, %0, %cst_18 {dimension_numbers = #tpu.dot_dimension_numbers<[1], [0], [0], [1], [0, 0, 1, 1], [], []>} : vector<2x32xf32>, vector<32x128xf32>, vector<2x128xf32> -> vector<2x128xf32>
    %72 = arith.addf %70, %71 : vector<2x128xf32>
    %73 = vector.extract_strided_slice %72 {offsets = [0, 0], sizes = [2, 32], strides = [1, 1]} : vector<2x128xf32> to vector<2x32xf32>
    %74 = arith.negf %73 : vector<2x32xf32>
    %75 = math.exp %74 : vector<2x32xf32>
    %cst_19 = arith.constant 1.000000e+00 : f32
    %76 = vector.broadcast %cst_19 : f32 to vector<2x32xf32>
    %77 = arith.addf %76, %75 : vector<2x32xf32>
    %78 = arith.divf %76, %77 : vector<2x32xf32>
    %79 = vector.extract_strided_slice %72 {offsets = [0, 32], sizes = [2, 32], strides = [1, 1]} : vector<2x128xf32> to vector<2x32xf32>
    %80 = arith.negf %79 : vector<2x32xf32>
    %81 = math.exp %80 : vector<2x32xf32>
    %cst_20 = arith.constant 1.000000e+00 : f32
    %82 = vector.broadcast %cst_20 : f32 to vector<2x32xf32>
    %83 = arith.addf %82, %81 : vector<2x32xf32>
    %84 = arith.divf %82, %83 : vector<2x32xf32>
    %85 = vector.extract_strided_slice %72 {offsets = [0, 64], sizes = [2, 32], strides = [1, 1]} : vector<2x128xf32> to vector<2x32xf32>
    %86 = math.tanh %85 : vector<2x32xf32>
    %87 = vector.extract_strided_slice %72 {offsets = [0, 96], sizes = [2, 32], strides = [1, 1]} : vector<2x128xf32> to vector<2x32xf32>
    %88 = arith.negf %87 : vector<2x32xf32>
    %89 = math.exp %88 : vector<2x32xf32>
    %cst_21 = arith.constant 1.000000e+00 : f32
    %90 = vector.broadcast %cst_21 : f32 to vector<2x32xf32>
    %91 = arith.addf %90, %89 : vector<2x32xf32>
    %92 = arith.divf %90, %91 : vector<2x32xf32>
    %93 = arith.mulf %84, %66 : vector<2x32xf32>
    %94 = arith.mulf %78, %86 : vector<2x32xf32>
    %95 = arith.addf %93, %94 : vector<2x32xf32>
    %96 = math.tanh %95 : vector<2x32xf32>
    %97 = arith.mulf %92, %96 : vector<2x32xf32>
    %98 = vector.extract_strided_slice %8 {offsets = [0, 3, 0], sizes = [2, 1, 128], strides = [1, 1, 1]} : vector<2x8x128xf32> to vector<2x1x128xf32>
    %99 = vector.shape_cast %98 : vector<2x1x128xf32> to vector<2x128xf32>
    %cst_22 = arith.constant dense<0.000000e+00> : vector<2x128xf32>
    %100 = tpu.matmul %97, %0, %cst_22 {dimension_numbers = #tpu.dot_dimension_numbers<[1], [0], [0], [1], [0, 0, 1, 1], [], []>} : vector<2x32xf32>, vector<32x128xf32>, vector<2x128xf32> -> vector<2x128xf32>
    %101 = arith.addf %99, %100 : vector<2x128xf32>
    %102 = vector.extract_strided_slice %101 {offsets = [0, 0], sizes = [2, 32], strides = [1, 1]} : vector<2x128xf32> to vector<2x32xf32>
    %103 = arith.negf %102 : vector<2x32xf32>
    %104 = math.exp %103 : vector<2x32xf32>
    %cst_23 = arith.constant 1.000000e+00 : f32
    %105 = vector.broadcast %cst_23 : f32 to vector<2x32xf32>
    %106 = arith.addf %105, %104 : vector<2x32xf32>
    %107 = arith.divf %105, %106 : vector<2x32xf32>
    %108 = vector.extract_strided_slice %101 {offsets = [0, 32], sizes = [2, 32], strides = [1, 1]} : vector<2x128xf32> to vector<2x32xf32>
    %109 = arith.negf %108 : vector<2x32xf32>
    %110 = math.exp %109 : vector<2x32xf32>
    %cst_24 = arith.constant 1.000000e+00 : f32
    %111 = vector.broadcast %cst_24 : f32 to vector<2x32xf32>
    %112 = arith.addf %111, %110 : vector<2x32xf32>
    %113 = arith.divf %111, %112 : vector<2x32xf32>
    %114 = vector.extract_strided_slice %101 {offsets = [0, 64], sizes = [2, 32], strides = [1, 1]} : vector<2x128xf32> to vector<2x32xf32>
    %115 = math.tanh %114 : vector<2x32xf32>
    %116 = vector.extract_strided_slice %101 {offsets = [0, 96], sizes = [2, 32], strides = [1, 1]} : vector<2x128xf32> to vector<2x32xf32>
    %117 = arith.negf %116 : vector<2x32xf32>
    %118 = math.exp %117 : vector<2x32xf32>
    %cst_25 = arith.constant 1.000000e+00 : f32
    %119 = vector.broadcast %cst_25 : f32 to vector<2x32xf32>
    %120 = arith.addf %119, %118 : vector<2x32xf32>
    %121 = arith.divf %119, %120 : vector<2x32xf32>
    %122 = arith.mulf %113, %95 : vector<2x32xf32>
    %123 = arith.mulf %107, %115 : vector<2x32xf32>
    %124 = arith.addf %122, %123 : vector<2x32xf32>
    %125 = math.tanh %124 : vector<2x32xf32>
    %126 = arith.mulf %121, %125 : vector<2x32xf32>
    %127 = vector.extract_strided_slice %8 {offsets = [0, 4, 0], sizes = [2, 1, 128], strides = [1, 1, 1]} : vector<2x8x128xf32> to vector<2x1x128xf32>
    %128 = vector.shape_cast %127 : vector<2x1x128xf32> to vector<2x128xf32>
    %cst_26 = arith.constant dense<0.000000e+00> : vector<2x128xf32>
    %129 = tpu.matmul %126, %0, %cst_26 {dimension_numbers = #tpu.dot_dimension_numbers<[1], [0], [0], [1], [0, 0, 1, 1], [], []>} : vector<2x32xf32>, vector<32x128xf32>, vector<2x128xf32> -> vector<2x128xf32>
    %130 = arith.addf %128, %129 : vector<2x128xf32>
    %131 = vector.extract_strided_slice %130 {offsets = [0, 0], sizes = [2, 32], strides = [1, 1]} : vector<2x128xf32> to vector<2x32xf32>
    %132 = arith.negf %131 : vector<2x32xf32>
    %133 = math.exp %132 : vector<2x32xf32>
    %cst_27 = arith.constant 1.000000e+00 : f32
    %134 = vector.broadcast %cst_27 : f32 to vector<2x32xf32>
    %135 = arith.addf %134, %133 : vector<2x32xf32>
    %136 = arith.divf %134, %135 : vector<2x32xf32>
    %137 = vector.extract_strided_slice %130 {offsets = [0, 32], sizes = [2, 32], strides = [1, 1]} : vector<2x128xf32> to vector<2x32xf32>
    %138 = arith.negf %137 : vector<2x32xf32>
    %139 = math.exp %138 : vector<2x32xf32>
    %cst_28 = arith.constant 1.000000e+00 : f32
    %140 = vector.broadcast %cst_28 : f32 to vector<2x32xf32>
    %141 = arith.addf %140, %139 : vector<2x32xf32>
    %142 = arith.divf %140, %141 : vector<2x32xf32>
    %143 = vector.extract_strided_slice %130 {offsets = [0, 64], sizes = [2, 32], strides = [1, 1]} : vector<2x128xf32> to vector<2x32xf32>
    %144 = math.tanh %143 : vector<2x32xf32>
    %145 = vector.extract_strided_slice %130 {offsets = [0, 96], sizes = [2, 32], strides = [1, 1]} : vector<2x128xf32> to vector<2x32xf32>
    %146 = arith.negf %145 : vector<2x32xf32>
    %147 = math.exp %146 : vector<2x32xf32>
    %cst_29 = arith.constant 1.000000e+00 : f32
    %148 = vector.broadcast %cst_29 : f32 to vector<2x32xf32>
    %149 = arith.addf %148, %147 : vector<2x32xf32>
    %150 = arith.divf %148, %149 : vector<2x32xf32>
    %151 = arith.mulf %142, %124 : vector<2x32xf32>
    %152 = arith.mulf %136, %144 : vector<2x32xf32>
    %153 = arith.addf %151, %152 : vector<2x32xf32>
    %154 = math.tanh %153 : vector<2x32xf32>
    %155 = arith.mulf %150, %154 : vector<2x32xf32>
    %156 = vector.extract_strided_slice %8 {offsets = [0, 5, 0], sizes = [2, 1, 128], strides = [1, 1, 1]} : vector<2x8x128xf32> to vector<2x1x128xf32>
    %157 = vector.shape_cast %156 : vector<2x1x128xf32> to vector<2x128xf32>
    %cst_30 = arith.constant dense<0.000000e+00> : vector<2x128xf32>
    %158 = tpu.matmul %155, %0, %cst_30 {dimension_numbers = #tpu.dot_dimension_numbers<[1], [0], [0], [1], [0, 0, 1, 1], [], []>} : vector<2x32xf32>, vector<32x128xf32>, vector<2x128xf32> -> vector<2x128xf32>
    %159 = arith.addf %157, %158 : vector<2x128xf32>
    %160 = vector.extract_strided_slice %159 {offsets = [0, 0], sizes = [2, 32], strides = [1, 1]} : vector<2x128xf32> to vector<2x32xf32>
    %161 = arith.negf %160 : vector<2x32xf32>
    %162 = math.exp %161 : vector<2x32xf32>
    %cst_31 = arith.constant 1.000000e+00 : f32
    %163 = vector.broadcast %cst_31 : f32 to vector<2x32xf32>
    %164 = arith.addf %163, %162 : vector<2x32xf32>
    %165 = arith.divf %163, %164 : vector<2x32xf32>
    %166 = vector.extract_strided_slice %159 {offsets = [0, 32], sizes = [2, 32], strides = [1, 1]} : vector<2x128xf32> to vector<2x32xf32>
    %167 = arith.negf %166 : vector<2x32xf32>
    %168 = math.exp %167 : vector<2x32xf32>
    %cst_32 = arith.constant 1.000000e+00 : f32
    %169 = vector.broadcast %cst_32 : f32 to vector<2x32xf32>
    %170 = arith.addf %169, %168 : vector<2x32xf32>
    %171 = arith.divf %169, %170 : vector<2x32xf32>
    %172 = vector.extract_strided_slice %159 {offsets = [0, 64], sizes = [2, 32], strides = [1, 1]} : vector<2x128xf32> to vector<2x32xf32>
    %173 = math.tanh %172 : vector<2x32xf32>
    %174 = vector.extract_strided_slice %159 {offsets = [0, 96], sizes = [2, 32], strides = [1, 1]} : vector<2x128xf32> to vector<2x32xf32>
    %175 = arith.negf %174 : vector<2x32xf32>
    %176 = math.exp %175 : vector<2x32xf32>
    %cst_33 = arith.constant 1.000000e+00 : f32
    %177 = vector.broadcast %cst_33 : f32 to vector<2x32xf32>
    %178 = arith.addf %177, %176 : vector<2x32xf32>
    %179 = arith.divf %177, %178 : vector<2x32xf32>
    %180 = arith.mulf %171, %153 : vector<2x32xf32>
    %181 = arith.mulf %165, %173 : vector<2x32xf32>
    %182 = arith.addf %180, %181 : vector<2x32xf32>
    %183 = math.tanh %182 : vector<2x32xf32>
    %184 = arith.mulf %179, %183 : vector<2x32xf32>
    %185 = vector.extract_strided_slice %8 {offsets = [0, 6, 0], sizes = [2, 1, 128], strides = [1, 1, 1]} : vector<2x8x128xf32> to vector<2x1x128xf32>
    %186 = vector.shape_cast %185 : vector<2x1x128xf32> to vector<2x128xf32>
    %cst_34 = arith.constant dense<0.000000e+00> : vector<2x128xf32>
    %187 = tpu.matmul %184, %0, %cst_34 {dimension_numbers = #tpu.dot_dimension_numbers<[1], [0], [0], [1], [0, 0, 1, 1], [], []>} : vector<2x32xf32>, vector<32x128xf32>, vector<2x128xf32> -> vector<2x128xf32>
    %188 = arith.addf %186, %187 : vector<2x128xf32>
    %189 = vector.extract_strided_slice %188 {offsets = [0, 0], sizes = [2, 32], strides = [1, 1]} : vector<2x128xf32> to vector<2x32xf32>
    %190 = arith.negf %189 : vector<2x32xf32>
    %191 = math.exp %190 : vector<2x32xf32>
    %cst_35 = arith.constant 1.000000e+00 : f32
    %192 = vector.broadcast %cst_35 : f32 to vector<2x32xf32>
    %193 = arith.addf %192, %191 : vector<2x32xf32>
    %194 = arith.divf %192, %193 : vector<2x32xf32>
    %195 = vector.extract_strided_slice %188 {offsets = [0, 32], sizes = [2, 32], strides = [1, 1]} : vector<2x128xf32> to vector<2x32xf32>
    %196 = arith.negf %195 : vector<2x32xf32>
    %197 = math.exp %196 : vector<2x32xf32>
    %cst_36 = arith.constant 1.000000e+00 : f32
    %198 = vector.broadcast %cst_36 : f32 to vector<2x32xf32>
    %199 = arith.addf %198, %197 : vector<2x32xf32>
    %200 = arith.divf %198, %199 : vector<2x32xf32>
    %201 = vector.extract_strided_slice %188 {offsets = [0, 64], sizes = [2, 32], strides = [1, 1]} : vector<2x128xf32> to vector<2x32xf32>
    %202 = math.tanh %201 : vector<2x32xf32>
    %203 = vector.extract_strided_slice %188 {offsets = [0, 96], sizes = [2, 32], strides = [1, 1]} : vector<2x128xf32> to vector<2x32xf32>
    %204 = arith.negf %203 : vector<2x32xf32>
    %205 = math.exp %204 : vector<2x32xf32>
    %cst_37 = arith.constant 1.000000e+00 : f32
    %206 = vector.broadcast %cst_37 : f32 to vector<2x32xf32>
    %207 = arith.addf %206, %205 : vector<2x32xf32>
    %208 = arith.divf %206, %207 : vector<2x32xf32>
    %209 = arith.mulf %200, %182 : vector<2x32xf32>
    %210 = arith.mulf %194, %202 : vector<2x32xf32>
    %211 = arith.addf %209, %210 : vector<2x32xf32>
    %212 = math.tanh %211 : vector<2x32xf32>
    %213 = arith.mulf %208, %212 : vector<2x32xf32>
    %214 = vector.extract_strided_slice %8 {offsets = [0, 7, 0], sizes = [2, 1, 128], strides = [1, 1, 1]} : vector<2x8x128xf32> to vector<2x1x128xf32>
    %215 = vector.shape_cast %214 : vector<2x1x128xf32> to vector<2x128xf32>
    %cst_38 = arith.constant dense<0.000000e+00> : vector<2x128xf32>
    %216 = tpu.matmul %213, %0, %cst_38 {dimension_numbers = #tpu.dot_dimension_numbers<[1], [0], [0], [1], [0, 0, 1, 1], [], []>} : vector<2x32xf32>, vector<32x128xf32>, vector<2x128xf32> -> vector<2x128xf32>
    %217 = arith.addf %215, %216 : vector<2x128xf32>
    %218 = vector.extract_strided_slice %217 {offsets = [0, 0], sizes = [2, 32], strides = [1, 1]} : vector<2x128xf32> to vector<2x32xf32>
    %219 = arith.negf %218 : vector<2x32xf32>
    %220 = math.exp %219 : vector<2x32xf32>
    %cst_39 = arith.constant 1.000000e+00 : f32
    %221 = vector.broadcast %cst_39 : f32 to vector<2x32xf32>
    %222 = arith.addf %221, %220 : vector<2x32xf32>
    %223 = arith.divf %221, %222 : vector<2x32xf32>
    %224 = vector.extract_strided_slice %217 {offsets = [0, 32], sizes = [2, 32], strides = [1, 1]} : vector<2x128xf32> to vector<2x32xf32>
    %225 = arith.negf %224 : vector<2x32xf32>
    %226 = math.exp %225 : vector<2x32xf32>
    %cst_40 = arith.constant 1.000000e+00 : f32
    %227 = vector.broadcast %cst_40 : f32 to vector<2x32xf32>
    %228 = arith.addf %227, %226 : vector<2x32xf32>
    %229 = arith.divf %227, %228 : vector<2x32xf32>
    %230 = vector.extract_strided_slice %217 {offsets = [0, 64], sizes = [2, 32], strides = [1, 1]} : vector<2x128xf32> to vector<2x32xf32>
    %231 = math.tanh %230 : vector<2x32xf32>
    %232 = vector.extract_strided_slice %217 {offsets = [0, 96], sizes = [2, 32], strides = [1, 1]} : vector<2x128xf32> to vector<2x32xf32>
    %233 = arith.negf %232 : vector<2x32xf32>
    %234 = math.exp %233 : vector<2x32xf32>
    %cst_41 = arith.constant 1.000000e+00 : f32
    %235 = vector.broadcast %cst_41 : f32 to vector<2x32xf32>
    %236 = arith.addf %235, %234 : vector<2x32xf32>
    %237 = arith.divf %235, %236 : vector<2x32xf32>
    %238 = arith.mulf %229, %211 : vector<2x32xf32>
    %239 = arith.mulf %223, %231 : vector<2x32xf32>
    %240 = arith.addf %238, %239 : vector<2x32xf32>
    %241 = math.tanh %240 : vector<2x32xf32>
    %242 = arith.mulf %237, %241 : vector<2x32xf32>
    %243 = vector.shape_cast %39 : vector<2x32xf32> to vector<1x2x32xf32>
    %244 = vector.shape_cast %68 : vector<2x32xf32> to vector<1x2x32xf32>
    %245 = vector.shape_cast %97 : vector<2x32xf32> to vector<1x2x32xf32>
    %246 = vector.shape_cast %126 : vector<2x32xf32> to vector<1x2x32xf32>
    %247 = vector.shape_cast %155 : vector<2x32xf32> to vector<1x2x32xf32>
    %248 = vector.shape_cast %184 : vector<2x32xf32> to vector<1x2x32xf32>
    %249 = vector.shape_cast %213 : vector<2x32xf32> to vector<1x2x32xf32>
    %250 = vector.shape_cast %242 : vector<2x32xf32> to vector<1x2x32xf32>
    %251 = tpu.concatenate %243, %244, %245, %246, %247, %248, %249, %250 in 0 : vector<1x2x32xf32>, vector<1x2x32xf32>, vector<1x2x32xf32>, vector<1x2x32xf32>, vector<1x2x32xf32>, vector<1x2x32xf32>, vector<1x2x32xf32>, vector<1x2x32xf32> -> vector<8x2x32xf32>
    %c0_42 = arith.constant 0 : index
    %c0_43 = arith.constant 0 : index
    %c0_44 = arith.constant 0 : index
    %252 = vector.load %arg4[%c0_42, %c0_43, %c0_44] : memref<8x2x32xf32, #tpu.memory_space<vmem>>, vector<8x2x32xf32>
    tpu.vector_store %arg4[%c0_42, %c0_43, %c0_44], %251 {strides = array<i32>} : memref<8x2x32xf32, #tpu.memory_space<vmem>>, vector<8x2x32xf32>,
    return
  }
}

</mosaic_0001>

<bundles_post_ra>
// kernel: tpu_custom_call.1
= control target key start
LH: loop header
LB: loop body
LE: loop exit
PB: predicated region body
PF: predicated region fallthrough
CT: control target
= control target key end

     0   :  { %9 = vsyncpa [#allocation3], 0  ;;  %s1609_s0 = inlined_call_operand.hbm [shape: f32[2,8,32], index: 0, kind: input, shape index: {}]   ;;  %s1610_s1 = inlined_call_operand.hbm [shape: f32[32,128], index: 1, kind: input, shape index: {}]   ;;  %s1611_s2 = inlined_call_operand.hbm [shape: f32[32,128], index: 2, kind: input, shape index: {}]   ;;  %s1612_s3 = inlined_call_operand.vmem [shape: f32[1,128], index: 3, kind: input, shape index: {}]   ;;  %s1613_s4 = inlined_call_operand.hbm [shape: f32[8,2,32], index: 4, kind: output, shape index: {}]  }
   0x1   :  { %10 = vsyncpa [#allocation6], 0 }
   0x2   :  { %11 = vsyncpa [#allocation4], 0  ;;  %s29_s17 = sshll.u32 %s1610_s1, 4  ;;  %s1370_s18 = smov [#allocation5]   ;;  %s30_s17 = int_to_ptr.hbm [resolvable:$true] %s29_s17 }
   0x3   :  { %s31_s19 = sshll.u32 %s1370_s18, 4  ;;  %s16_s22 = sshll.u32 %s1609_s0, 4  ;;  %s32_s19 = int_to_ptr.vmem [resolvable:$true] %s31_s19  ;;  %s17_s22 = int_to_ptr.hbm [resolvable:$true] %s16_s22 }
   0x4   :  { %s1371_s23 = smov 128   ;;  %s1372_s24 = smov 8  }
   0x5   :  { %37 = dma.hbm_to_vmem [thread:$0]  %s30_s17, 512, %s32_s19, [#allocation6], %s1371_s23, %s1371_s23, %s1372_s24  }
   0x6   :  { %s1373_s25 = smov [#allocation2]   ;;  %s42_s29 = sshll.u32 %s1611_s2, 4  ;;  %s43_s29 = int_to_ptr.hbm [resolvable:$true] %s42_s29 }
   0x7   :  { %s18_s26 = sshll.u32 %s1373_s25, 4  ;;  %s1374_s1 = smov [#allocation7]   ;;  %s19_s26 = int_to_ptr.vmem [resolvable:$true] %s18_s26 }
   0x8   :  { %24 = dma.hbm_to_vmem [thread:$0]  %s17_s22, 256, %s19_s26, [#allocation3], %s1371_s23, %s1371_s23, %s1372_s24  }
   0x9   :  { %s44_s30 = sshll.u32 %s1374_s1, 4  ;;  %s45_s30 = int_to_ptr.vmem [resolvable:$true] %s44_s30 }
   0xa   :  { %50 = dma.hbm_to_vmem [thread:$0]  %s43_s29, 512, %s45_s30, [#allocation6], %s1371_s23, %s1371_s23, %s1372_s24  }
   0xb   :  { %1364 = dma.done.wait [#allocation3], 256  }
   0xc   :  { %1365 = vsyncadd [#allocation3], 4294967040 }
   0xd   :  { %1366 = dma.done.wait [#allocation6], 1024  }
   0xe   :  { %1367 = vsyncadd [#allocation6], 4294966272  ;;  %v74_v0 = vld [vmem:[#allocation5 + $0x18] sm:$0xff]  ;;  %v73_v1 = vld [vmem:[#allocation5 + $0x10] sm:$0xff]  ;;  %vm79_vm0 = vcmask 261120   ;;  %v1375_v9 = vmov 0.0  }
   0xf   :  { %v68_v2 = vld [vmem:[#allocation7 + $0x18] sm:$0xff]  ;;  %98 = vmatpush.msra.mxu0 %v74_v0  ;;  %v67_v3 = vld [vmem:[#allocation7 + $0x10] sm:$0xff]  ;;  %v72_v4 = vld [vmem:[#allocation5 + $0x8] sm:$0xff]  ;;  %s1376_s5 = smov 64   ;;  %vm215_vm9 = vcmask 1041409   ;;  %vm1068_vm10 = vcmask 254976  }
  0x10   :  { %124 = vmatpush.msra.mxu1 %v68_v2  ;;  %v66_v5 = vld [vmem:[#allocation7 + $0x8] sm:$0xff]  ;;  %233 = vmatpush.msra.mxu2 %v68_v2  ;;  %v71_v6 = vld [vmem:[#allocation5] sm:$0xff]  ;;  %v69_v8 = vld [vmem:[#allocation2] sm:$0xff]  ;;  %s1378_s6 = smov [#allocation8]   ;;  %s1083_s10 = sshll.u32 %s1613_s4, 4  ;;  %s1084_s10 = int_to_ptr.hbm [resolvable:$true] %s1083_s10 }
  0x11   :  { %347 = vmatpush.msra.mxu3 %v68_v2  ;;  %99 = vmatpush.msra.mxu0 %v73_v1  ;;  %v65_v7 = vld [vmem:[#allocation7] sm:$0xff]  ;;  %v70_v10 = vld [vmem:[#allocation2 + $0x8] sm:$0xff]  ;;  %v1139_v13 = vld [vmem:[%s1612_s3] ss:$0 sm:$0xff]  ;;  %s1377_s3 = smov 32   ;;  %s1081_s7 = sshll.u32 %s1378_s6, 4  ;;  %s1082_s7 = int_to_ptr.vmem [resolvable:$true] %s1081_s7 }
  0x12   :  { %125 = vmatpush.msra.mxu1 %v67_v3  ;;  %234 = vmatpush.msra.mxu2 %v67_v3  ;;  %s1379_s11 = smov 2  }
  0x13   :  { %348 = vmatpush.msra.mxu3 %v67_v3  ;;  %100 = vmatpush.msra.mxu0 %v72_v4 }
  0x14   :  { %126 = vmatpush.msra.mxu1 %v66_v5  ;;  %235 = vmatpush.msra.mxu2 %v66_v5 }
  0x15   :  { %349 = vmatpush.msra.mxu3 %v66_v5  ;;  %101 = vmatpush.msra.mxu0 %v71_v6 }
  0x16   :  { %127 = vmatpush.msra.mxu1 %v65_v7  ;;  %1097 = vmatmul.msk.f32.vlgmr.msra.gmra.mxu0 %vm79_vm0, %v69_v8 }
  0x17   :  { %128 = vmatmul.f32.vlgmr.msra.gmra.mxu1 %v1375_v9  ;;  %236 = vmatpush.msra.mxu2 %v65_v7 }
  0x18   :  { %350 = vmatpush.msra.mxu3 %v65_v7  ;;  %463 = vmatpush.msrb.mxu1 %v68_v2 }
  0x19   :  { %579 = vmatpush.msrb.mxu2 %v68_v2  ;;  %811 = vmatpush.msrb.mxu0 %v68_v2 }
  0x1a   :  { %695 = vmatpush.msrb.mxu3 %v68_v2  ;;  %464 = vmatpush.msrb.mxu1 %v67_v3 }
  0x1b   :  { %580 = vmatpush.msrb.mxu2 %v67_v3  ;;  %812 = vmatpush.msrb.mxu0 %v67_v3 }
  0x1c   :  { %696 = vmatpush.msrb.mxu3 %v67_v3  ;;  %465 = vmatpush.msrb.mxu1 %v66_v5 }
  0x1d   :  { %581 = vmatpush.msrb.mxu2 %v66_v5  ;;  %813 = vmatpush.msrb.mxu0 %v66_v5 }
  0x1e   :  { %697 = vmatpush.msrb.mxu3 %v66_v5  ;;  %1098 = vmatmul.msk.f32.gmra.mxu0 %vm79_vm0, %v70_v10 }
  0x1f   :  { %466 = vmatpush.msrb.mxu1 %v65_v7  ;;  %582 = vmatpush.msrb.mxu2 %v65_v7 }
  0x20   :  { %698 = vmatpush.msrb.mxu3 %v65_v7  ;;  %814 = vmatpush.msrb.mxu0 %v65_v7 }
  0x21   :  { %927 = vmatpush.msra.mxu1 %v68_v2 }
  0x23   :  { %928 = vmatpush.msra.mxu1 %v67_v3 }
  0x25   :  { %929 = vmatpush.msra.mxu1 %v66_v5 }
  0x27   :  { %930 = vmatpush.msra.mxu1 %v65_v7 }
  0x93   :  { %v103_v11 = vpop.f32.mrf.mxu0 }
  0x94   :  { %v129_v12 = vpop.f32.mrf.mxu1  ;;  %v1422_v18 = vadd.f32 %v1139_v13, %v103_v11 }
  0x95   :  { %v133_v14 = vrot.slane %v129_v12, 1 }
  0x96   :  { %v136_v19 = vadd.f32 %v129_v12, %v1422_v18 }
  0x98   :  { %v1099_v23 = vmul.f32 -1.442695, %v136_v19 }
  0x9b   :  { %v106_v15 = vpop.f32.mrf.mxu0 }
  0x9c   :  { %v1419_v16 = vadd.f32 %v1139_v13, %v106_v15 }
  0x9e   :  { %v137_v17 = vadd.f32 %v133_v14, %v1419_v16 }
  0xa0   :  { %1140 = vtanh.f32 %v137_v17  ;;  %v1100_v22 = vmul.f32 -1.442695, %v137_v17 }
  0xa1   :  { %1142 = vtanh.f32 %v136_v19 }
  0xa2   :  { %1144 = vpow2.f32 %v1100_v22 }
  0xa3   :  { %1146 = vpow2.f32 %v1099_v23 }
  0xa6   :  { %v1141_v20 = vpop.eup %1140 }
  0xa7   :  { %184 = vrot.lane.b32.xlu0 %v1141_v20, %s1376_s5  ;;  %v1143_v21 = vpop.eup %1142 }
  0xa8   :  { %v1145_v24 = vpop.eup %1144 }
  0xa9   :  { %v145_v25 = vadd.f32 1.0, %v1145_v24  ;;  %v1147_v26 = vpop.eup %1146 }
  0xaa   :  { %v144_v27 = vadd.f32 1.0, %v1147_v26 }
  0xab   :  { %1148 = vrcp.f32 %v145_v25  ;;  %v172_v36 = vand.u32 2147483648, %v145_v25  ;;  %vm166_vm2 = vweird.f32 %v145_v25  ;;  %v170_v37 = vand.u32 2147483647, %v145_v25 }
  0xac   :  { %1150 = vrcp.f32 %v144_v27  ;;  %v157_v45 = vand.u32 2147483648, %v144_v27  ;;  %vm151_vm6 = vweird.f32 %v144_v27  ;;  %v155_v46 = vand.u32 2147483647, %v144_v27 }
  0xad   :  { %v173_v40 = vor.u32 1.1754944e-38, %v172_v36  ;;  %vm171_vm4 = vcmp.eq.f32.partialorder %v170_v37, 8.507059e+37 }
  0xae   :  { %v158_v48 = vor.u32 1.1754944e-38, %v157_v45  ;;  %vm156_vm8 = vcmp.eq.f32.partialorder %v155_v46, 8.507059e+37 }
  0xaf   :  { %182 = vrot.lane.b32.xlu0 %v1143_v21, %s1376_s5 }
  0xb1   :  { %v1149_v28 = vpop.eup %1148 }
  0xb2   :  { %v162_v29 = vmul.f32 %v1149_v28, %v145_v25  ;;  %v1151_v31 = vpop.eup %1150  ;;  %vm167_vm1 = vweird.f32 %v1149_v28 }
  0xb3   :  { %v147_v33 = vmul.f32 %v1151_v31, %v144_v27  ;;  %vm168_vm3 = vmor %vm166_vm2, %vm167_vm1  ;;  %vm152_vm5 = vweird.f32 %v1151_v31 }
  0xb4   :  { %v163_v30 = vsub.f32 1.0, %v162_v29  ;;  %vm153_vm7 = vmor %vm151_vm6, %vm152_vm5 }
  0xb5   :  { %v148_v35 = vsub.f32 1.0, %v147_v33 }
  0xb6   :  { %v164_v32 = vmul.f32 %v1149_v28, %v163_v30 }
  0xb7   :  { %v149_v39 = vmul.f32 %v1151_v31, %v148_v35 }
  0xb8   :  { %v165_v34 = vadd.f32 %v1149_v28, %v164_v32 }
  0xb9   :  { %v150_v44 = vadd.f32 %v1151_v31, %v149_v39 }
  0xba   :  { %v169_v38 = vsel %vm168_vm3, %v1149_v28, %v165_v34 }
  0xbb   :  { %v174_v42 = vsel %vm171_vm4, %v173_v40, %v169_v38  ;;  %v154_v47 = vsel %vm153_vm7, %v1151_v31, %v150_v44 }
  0xbc   :  { %v159_v49 = vsel %vm156_vm8, %v158_v48, %v154_v47  ;;  %v179_v52 = vmul.f32 0.0, %v174_v42 }
  0xbd   :  { %v178_v55 = vmul.f32 0.0, %v159_v49 }
 0x119   :  { %v185_v41 = vpop.permute.xlu0 %184 }
 0x11a   :  { %v189_v43 = vmul.f32 %v185_v41, %v174_v42 }
 0x11c   :  { %194 = vrot.lane.b32.xlu1 %v189_v43, %s1377_s3 }
 0x121   :  { %v183_v50 = vpop.permute.xlu0 %182 }
 0x122   :  { %v188_v51 = vmul.f32 %v183_v50, %v159_v49 }
 0x124   :  { %192 = vrot.lane.b32.xlu1 %v188_v51, %s1377_s3 }
 0x18e   :  { %v195_v53 = vpop.permute.xlu1 %194 }
 0x18f   :  { %v1429_v54 = vadd.f32 %v195_v53, %v179_v52 }
 0x191   :  { %1152 = vtanh.f32 %v1429_v54  ;;  %v290_v41 = vrot.slane %v1429_v54, 7 }
 0x196   :  { %v193_v56 = vpop.permute.xlu1 %192 }
 0x197   :  { %v1153_v57 = vpop.eup %1152  ;;  %v1432_v58 = vadd.f32 %v193_v56, %v178_v55 }
 0x198   :  { %206 = vrot.lane.b32.xlu2 %v1153_v57, %s1376_s5 }
 0x199   :  { %1154 = vtanh.f32 %v1432_v58  ;;  %v289_v46 = vrot.slane %v1432_v58, 7 }
 0x19f   :  { %v1155_v59 = vpop.eup %1154 }
 0x1a0   :  { %204 = vrot.lane.b32.xlu2 %v1155_v59, %s1376_s5 }
 0x1f2   :  { %v207_v60 = vpop.permute.xlu2 %206 }
 0x1f3   :  { %v211_v61 = vmul.f32 %v207_v60, %v174_v42 }
 0x1f5   :  { %v214_v63 = vrot.slane %v211_v61, 7 }
 0x1fa   :  { %v205_v62 = vpop.permute.xlu2 %204 }
 0x1fb   :  { %v210_v0 = vmul.f32 %v205_v62, %v159_v49 }
 0x1fd   :  { %v216_v1 = vsel %vm215_vm9, %v214_v63, %v210_v0 }
 0x1fe   :  { %217 = vrot.lane.b32.xlu0 %v216_v1, %s1377_s3 }
 0x270   :  { %v218_v2 = vpop.permute.xlu0 %217 }
 0x271   :  { %1069 = vst.msk [vmem:[#allocation8] sm:$0x3] %vm1068_vm10, %v218_v2  ;;  %1101 = vmatmul.msk.f32.vlgmr.msra.gmra.mxu2 %vm79_vm0, %v218_v2 }
 0x2f4   :  { %v238_v3 = vpop.f32.mrf.mxu2 }
 0x2f5   :  { %v242_v4 = vrot.slane %v238_v3, 7  ;;  %v246_v5 = vadd.f32 %v238_v3, %v1419_v16 }
 0x2f7   :  { %v245_v6 = vadd.f32 %v242_v4, %v1422_v18  ;;  %1156 = vtanh.f32 %v246_v5  ;;  %v1103_v9 = vmul.f32 -1.442695, %v246_v5 }
 0x2f9   :  { %1158 = vtanh.f32 %v245_v6  ;;  %v1102_v14 = vmul.f32 -1.442695, %v245_v6 }
 0x2fa   :  { %1160 = vpow2.f32 %v1103_v9 }
 0x2fd   :  { %v1157_v7 = vpop.eup %1156 }
 0x2fe   :  { %299 = vrot.lane.b32.xlu2 %v1157_v7, %s1376_s5 }
 0x2ff   :  { %v1159_v8 = vpop.eup %1158 }
 0x300   :  { %297 = vrot.lane.b32.xlu1 %v1159_v8, %s1376_s5  ;;  %v1161_v10 = vpop.eup %1160 }
 0x301   :  { %v254_v11 = vadd.f32 1.0, %v1161_v10 }
 0x303   :  { %1162 = vrcp.f32 %v254_v11  ;;  %v281_v21 = vand.u32 2147483648, %v254_v11  ;;  %vm275_vm12 = vweird.f32 %v254_v11  ;;  %v279_v23 = vand.u32 2147483647, %v254_v11 }
 0x304   :  { %1164 = vpow2.f32 %v1102_v14 }
 0x305   :  { %v282_v25 = vor.u32 1.1754944e-38, %v281_v21  ;;  %vm280_vm14 = vcmp.eq.f32.partialorder %v279_v23, 8.507059e+37 }
 0x309   :  { %v1163_v12 = vpop.eup %1162 }
 0x30a   :  { %v271_v13 = vmul.f32 %v1163_v12, %v254_v11  ;;  %v1165_v19 = vpop.eup %1164  ;;  %vm276_vm11 = vweird.f32 %v1163_v12 }
 0x30b   :  { %v253_v22 = vadd.f32 1.0, %v1165_v19  ;;  %vm277_vm13 = vmor %vm275_vm12, %vm276_vm11 }
 0x30c   :  { %v272_v15 = vsub.f32 1.0, %v271_v13 }
 0x30d   :  { %1166 = vrcp.f32 %v253_v22  ;;  %v266_v34 = vand.u32 2147483648, %v253_v22  ;;  %vm260_vm1 = vweird.f32 %v253_v22  ;;  %v264_v35 = vand.u32 2147483647, %v253_v22 }
 0x30e   :  { %v273_v17 = vmul.f32 %v1163_v12, %v272_v15 }
 0x30f   :  { %v267_v37 = vor.u32 1.1754944e-38, %v266_v34  ;;  %vm265_vm3 = vcmp.eq.f32.partialorder %v264_v35, 8.507059e+37 }
 0x310   :  { %v274_v20 = vadd.f32 %v1163_v12, %v273_v17 }
 0x312   :  { %v278_v24 = vsel %vm277_vm13, %v1163_v12, %v274_v20 }
 0x313   :  { %v283_v27 = vsel %vm280_vm14, %v282_v25, %v278_v24  ;;  %v1167_v29 = vpop.eup %1166 }
 0x314   :  { %v256_v30 = vmul.f32 %v1167_v29, %v253_v22  ;;  %vm261_vm15 = vweird.f32 %v1167_v29  ;;  %v294_v42 = vmul.f32 %v290_v41, %v283_v27 }
 0x315   :  { %vm262_vm2 = vmor %vm260_vm1, %vm261_vm15 }
 0x316   :  { %v257_v31 = vsub.f32 1.0, %v256_v30 }
 0x318   :  { %v258_v32 = vmul.f32 %v1167_v29, %v257_v31 }
 0x31a   :  { %v259_v33 = vadd.f32 %v1167_v29, %v258_v32 }
 0x31c   :  { %v263_v36 = vsel %vm262_vm2, %v1167_v29, %v259_v33 }
 0x31d   :  { %v268_v39 = vsel %vm265_vm3, %v267_v37, %v263_v36 }
 0x31e   :  { %v293_v47 = vmul.f32 %v289_v46, %v268_v39 }
 0x358   :  { %v300_v26 = vpop.permute.xlu2 %299 }
 0x359   :  { %v304_v28 = vmul.f32 %v300_v26, %v283_v27 }
 0x35b   :  { %309 = vrot.lane.b32.xlu1 %v304_v28, %s1377_s3 }
 0x372   :  { %v298_v38 = vpop.permute.xlu1 %297 }
 0x373   :  { %v303_v40 = vmul.f32 %v298_v38, %v268_v39 }
 0x375   :  { %307 = vrot.lane.b32.xlu0 %v303_v40, %s1377_s3 }
 0x3cd   :  { %v310_v43 = vpop.permute.xlu1 %309 }
 0x3ce   :  { %v1448_v44 = vadd.f32 %v310_v43, %v294_v42 }
 0x3d0   :  { %1168 = vtanh.f32 %v1448_v44  ;;  %v405_v34 = vrot.slane %v1448_v44, 7 }
 0x3d6   :  { %v1169_v45 = vpop.eup %1168 }
 0x3d7   :  { %321 = vrot.lane.b32.xlu0 %v1169_v45, %s1376_s5 }
 0x3e7   :  { %v308_v48 = vpop.permute.xlu0 %307 }
 0x3e8   :  { %v1453_v49 = vadd.f32 %v308_v48, %v293_v47 }
 0x3ea   :  { %1170 = vtanh.f32 %v1453_v49  ;;  %v404_v33 = vrot.slane %v1453_v49, 7 }
 0x3f0   :  { %v1171_v50 = vpop.eup %1170 }
 0x3f1   :  { %319 = vrot.lane.b32.xlu2 %v1171_v50, %s1376_s5 }
 0x449   :  { %v322_v51 = vpop.permute.xlu0 %321 }
 0x44a   :  { %v326_v54 = vmul.f32 %v322_v51, %v283_v27 }
 0x44b   :  { %v320_v52 = vpop.permute.xlu2 %319 }
 0x44c   :  { %v325_v53 = vmul.f32 %v320_v52, %v268_v39 }
 0x44e   :  { %v329_v55 = vrot.slane %v325_v53, 1 }
 0x450   :  { %v1458_v56 = vsel %vm215_vm9, %v326_v54, %v329_v55 }
 0x451   :  { %331 = vrot.lane.b32.xlu1 %v1458_v56, %s1377_s3 }
 0x4c3   :  { %v332_v57 = vpop.permute.xlu1 %331 }
 0x4c4   :  { %1104 = vmatmul.msk.f32.vlgmr.msra.gmra.mxu3 %vm79_vm0, %v332_v57 }
 0x547   :  { %v352_v58 = vpop.f32.mrf.mxu3 }
 0x548   :  { %v356_v59 = vrot.slane %v352_v58, 6  ;;  %v357_v60 = vrot.slane %v352_v58, 7 }
 0x54a   :  { %v360_v61 = vadd.f32 %v356_v59, %v1422_v18  ;;  %v361_v62 = vadd.f32 %v357_v60, %v1419_v16 }
 0x54c   :  { %1172 = vtanh.f32 %v360_v61  ;;  %v1105_v1 = vmul.f32 -1.442695, %v360_v61  ;;  %v1106_v5 = vmul.f32 -1.442695, %v361_v62 }
 0x54d   :  { %1174 = vtanh.f32 %v361_v62 }
 0x54e   :  { %1176 = vpow2.f32 %v1105_v1 }
 0x552   :  { %v1173_v63 = vpop.eup %1172 }
 0x553   :  { %v1175_v0 = vpop.eup %1174  ;;  %412 = vrot.lane.b32.xlu2 %v1173_v63, %s1376_s5 }
 0x554   :  { %414 = vrot.lane.b32.xlu0 %v1175_v0, %s1376_s5  ;;  %v1177_v2 = vpop.eup %1176 }
 0x555   :  { %v368_v3 = vadd.f32 1.0, %v1177_v2 }
 0x557   :  { %1178 = vrcp.f32 %v368_v3  ;;  %v381_v12 = vand.u32 2147483648, %v368_v3  ;;  %vm375_vm5 = vweird.f32 %v368_v3  ;;  %v379_v13 = vand.u32 2147483647, %v368_v3 }
 0x558   :  { %1180 = vpow2.f32 %v1106_v5 }
 0x559   :  { %v382_v15 = vor.u32 1.1754944e-38, %v381_v12  ;;  %vm380_vm7 = vcmp.eq.f32.partialorder %v379_v13, 8.507059e+37 }
 0x55d   :  { %v1179_v4 = vpop.eup %1178 }
 0x55e   :  { %v371_v6 = vmul.f32 %v1179_v4, %v368_v3  ;;  %v1181_v9 = vpop.eup %1180  ;;  %vm376_vm4 = vweird.f32 %v1179_v4 }
 0x55f   :  { %v369_v10 = vadd.f32 1.0, %v1181_v9  ;;  %vm377_vm6 = vmor %vm375_vm5, %vm376_vm4 }
 0x560   :  { %v372_v7 = vsub.f32 1.0, %v371_v6 }
 0x561   :  { %1182 = vrcp.f32 %v369_v10  ;;  %v396_v26 = vand.u32 2147483648, %v369_v10  ;;  %vm390_vm11 = vweird.f32 %v369_v10  ;;  %v394_v27 = vand.u32 2147483647, %v369_v10 }
 0x562   :  { %v373_v8 = vmul.f32 %v1179_v4, %v372_v7 }
 0x563   :  { %v397_v29 = vor.u32 1.1754944e-38, %v396_v26  ;;  %vm395_vm13 = vcmp.eq.f32.partialorder %v394_v27, 8.507059e+37 }
 0x564   :  { %v374_v11 = vadd.f32 %v1179_v4, %v373_v8 }
 0x566   :  { %v378_v14 = vsel %vm377_vm6, %v1179_v4, %v374_v11 }
 0x567   :  { %v383_v19 = vsel %vm380_vm7, %v382_v15, %v378_v14  ;;  %v1183_v21 = vpop.eup %1182 }
 0x568   :  { %v386_v22 = vmul.f32 %v1183_v21, %v369_v10  ;;  %vm391_vm8 = vweird.f32 %v1183_v21  ;;  %v408_v35 = vmul.f32 %v404_v33, %v383_v19 }
 0x569   :  { %vm392_vm12 = vmor %vm390_vm11, %vm391_vm8 }
 0x56a   :  { %v387_v23 = vsub.f32 1.0, %v386_v22 }
 0x56c   :  { %v388_v24 = vmul.f32 %v1183_v21, %v387_v23 }
 0x56e   :  { %v389_v25 = vadd.f32 %v1183_v21, %v388_v24 }
 0x570   :  { %v393_v28 = vsel %vm392_vm12, %v1183_v21, %v389_v25 }
 0x571   :  { %v398_v31 = vsel %vm395_vm13, %v397_v29, %v393_v28 }
 0x572   :  { %v409_v36 = vmul.f32 %v405_v34, %v398_v31 }
 0x5ad   :  { %v413_v17 = vpop.permute.xlu2 %412 }
 0x5ae   :  { %v418_v20 = vmul.f32 %v413_v17, %v383_v19 }
 0x5b0   :  { %422 = vrot.lane.b32.xlu1 %v418_v20, %s1377_s3 }
 0x5c6   :  { %v415_v30 = vpop.permute.xlu0 %414 }
 0x5c7   :  { %v419_v32 = vmul.f32 %v415_v30, %v398_v31 }
 0x5c9   :  { %424 = vrot.lane.b32.xlu2 %v419_v32, %s1377_s3 }
 0x622   :  { %v423_v37 = vpop.permute.xlu1 %422 }
 0x623   :  { %v425_v38 = vpop.permute.xlu2 %424  ;;  %v1471_v39 = vadd.f32 %v423_v37, %v408_v35 }
 0x624   :  { %v1473_v40 = vadd.f32 %v425_v38, %v409_v36 }
 0x625   :  { %1184 = vtanh.f32 %v1471_v39  ;;  %v520_v29 = vrot.slane %v1471_v39, 7 }
 0x626   :  { %1186 = vtanh.f32 %v1473_v40  ;;  %v521_v34 = vrot.slane %v1473_v40, 7 }
 0x62b   :  { %v1185_v41 = vpop.eup %1184 }
 0x62c   :  { %v1187_v42 = vpop.eup %1186  ;;  %434 = vrot.lane.b32.xlu0 %v1185_v41, %s1376_s5 }
 0x62d   :  { %436 = vrot.lane.b32.xlu1 %v1187_v42, %s1376_s5 }
 0x69e   :  { %v435_v43 = vpop.permute.xlu0 %434 }
 0x69f   :  { %v437_v44 = vpop.permute.xlu1 %436  ;;  %v440_v45 = vmul.f32 %v435_v43, %v383_v19 }
 0x6a0   :  { %v441_v46 = vmul.f32 %v437_v44, %v398_v31 }
 0x6a1   :  { %v444_v47 = vrot.slane %v440_v45, 2 }
 0x6a2   :  { %v445_v48 = vrot.slane %v441_v46, 1  ;;  %v1123_v49 = vrot.slane %v441_v46, 9 }
 0x6a4   :  { %v446_v50 = vsel %vm215_vm9, %v445_v48, %v444_v47  ;;  %v1481_v51 = vsel %vm215_vm9, %v1123_v49, %v444_v47 }
 0x6a5   :  { %447 = vrot.lane.b32.xlu2 %v446_v50, %s1377_s3 }
 0x6ff   :  { %v448_v52 = vpop.permute.xlu2 %447 }
 0x700   :  { %1107 = vmatmul.msk.f32.vlgmr.msrb.gmra.mxu1 %vm79_vm0, %v448_v52 }
 0x77d   :  { %v468_v53 = vpop.f32.mrf.mxu1 }
 0x77e   :  { %v472_v54 = vrot.slane %v468_v53, 5  ;;  %v473_v55 = vrot.slane %v468_v53, 6 }
 0x780   :  { %v476_v57 = vadd.f32 %v472_v54, %v1422_v18  ;;  %v477_v58 = vadd.f32 %v473_v55, %v1419_v16 }
 0x782   :  { %1188 = vtanh.f32 %v476_v57  ;;  %v1108_v61 = vmul.f32 -1.442695, %v476_v57  ;;  %v1109_v62 = vmul.f32 -1.442695, %v477_v58 }
 0x783   :  { %1190 = vtanh.f32 %v477_v58 }
 0x784   :  { %1192 = vpow2.f32 %v1108_v61 }
 0x785   :  { %1194 = vpow2.f32 %v1109_v62 }
 0x788   :  { %v1189_v59 = vpop.eup %1188 }
 0x789   :  { %v1191_v60 = vpop.eup %1190  ;;  %528 = vrot.lane.b32.xlu0 %v1189_v59, %s1376_s5 }
 0x78a   :  { %530 = vrot.lane.b32.xlu1 %v1191_v60, %s1376_s5  ;;  %v1193_v63 = vpop.eup %1192 }
 0x78b   :  { %v1195_v0 = vpop.eup %1194  ;;  %v484_v1 = vadd.f32 1.0, %v1193_v63 }
 0x78c   :  { %v485_v2 = vadd.f32 1.0, %v1195_v0 }
 0x78d   :  { %1196 = vrcp.f32 %v484_v1  ;;  %v497_v13 = vand.u32 2147483648, %v484_v1  ;;  %vm491_vm1 = vweird.f32 %v484_v1  ;;  %v495_v15 = vand.u32 2147483647, %v484_v1 }
 0x78e   :  { %1198 = vrcp.f32 %v485_v2  ;;  %v512_v14 = vand.u32 2147483648, %v485_v2  ;;  %vm506_vm2 = vweird.f32 %v485_v2  ;;  %v510_v17 = vand.u32 2147483647, %v485_v2 }
 0x78f   :  { %v498_v21 = vor.u32 1.1754944e-38, %v497_v13  ;;  %vm496_vm5 = vcmp.eq.f32.partialorder %v495_v15, 8.507059e+37 }
 0x790   :  { %v513_v22 = vor.u32 1.1754944e-38, %v512_v14  ;;  %vm511_vm6 = vcmp.eq.f32.partialorder %v510_v17, 8.507059e+37 }
 0x793   :  { %v1197_v3 = vpop.eup %1196 }
 0x794   :  { %v1199_v4 = vpop.eup %1198  ;;  %v487_v5 = vmul.f32 %v1197_v3, %v484_v1  ;;  %vm492_vm14 = vweird.f32 %v1197_v3 }
 0x795   :  { %v502_v6 = vmul.f32 %v1199_v4, %v485_v2  ;;  %vm507_vm15 = vweird.f32 %v1199_v4  ;;  %vm493_vm3 = vmor %vm491_vm1, %vm492_vm14 }
 0x796   :  { %v488_v7 = vsub.f32 1.0, %v487_v5  ;;  %vm508_vm4 = vmor %vm506_vm2, %vm507_vm15 }
 0x797   :  { %v503_v8 = vsub.f32 1.0, %v502_v6 }
 0x798   :  { %v489_v9 = vmul.f32 %v1197_v3, %v488_v7 }
 0x799   :  { %v504_v10 = vmul.f32 %v1199_v4, %v503_v8 }
 0x79a   :  { %v490_v11 = vadd.f32 %v1197_v3, %v489_v9 }
 0x79b   :  { %v505_v12 = vadd.f32 %v1199_v4, %v504_v10 }
 0x79c   :  { %v494_v19 = vsel %vm493_vm3, %v1197_v3, %v490_v11 }
 0x79d   :  { %v509_v20 = vsel %vm508_vm4, %v1199_v4, %v505_v12  ;;  %v499_v24 = vsel %vm496_vm5, %v498_v21, %v494_v19 }
 0x79e   :  { %v514_v26 = vsel %vm511_vm6, %v513_v22, %v509_v20  ;;  %v524_v30 = vmul.f32 %v520_v29, %v499_v24 }
 0x79f   :  { %v525_v35 = vmul.f32 %v521_v34, %v514_v26 }
 0x7fb   :  { %v529_v23 = vpop.permute.xlu0 %528 }
 0x7fc   :  { %v531_v25 = vpop.permute.xlu1 %530  ;;  %v534_v27 = vmul.f32 %v529_v23, %v499_v24 }
 0x7fd   :  { %v535_v28 = vmul.f32 %v531_v25, %v514_v26 }
 0x7fe   :  { %538 = vrot.lane.b32.xlu2 %v534_v27, %s1377_s3 }
 0x7ff   :  { %540 = vrot.lane.b32.xlu0 %v535_v28, %s1377_s3 }
 0x858   :  { %v539_v31 = vpop.permute.xlu2 %538 }
 0x859   :  { %v1492_v32 = vadd.f32 %v539_v31, %v524_v30 }
 0x85b   :  { %1200 = vtanh.f32 %v1492_v32  ;;  %v636_v31 = vrot.slane %v1492_v32, 7 }
 0x861   :  { %v1201_v33 = vpop.eup %1200 }
 0x862   :  { %550 = vrot.lane.b32.xlu1 %v1201_v33, %s1376_s5 }
 0x871   :  { %v541_v36 = vpop.permute.xlu0 %540 }
 0x872   :  { %v1497_v37 = vadd.f32 %v541_v36, %v525_v35 }
 0x874   :  { %1202 = vtanh.f32 %v1497_v37 }
 0x87a   :  { %v1203_v38 = vpop.eup %1202 }
 0x87b   :  { %552 = vrot.lane.b32.xlu2 %v1203_v38, %s1376_s5 }
 0x8d4   :  { %v551_v39 = vpop.permute.xlu1 %550 }
 0x8d5   :  { %v553_v41 = vpop.permute.xlu2 %552  ;;  %v556_v42 = vmul.f32 %v551_v39, %v499_v24 }
 0x8d6   :  { %v557_v43 = vmul.f32 %v553_v41, %v514_v26  ;;  %v637_v26 = vrot.slane %v1497_v37, 7 }
 0x8d7   :  { %v560_v44 = vrot.slane %v556_v42, 3 }
 0x8d8   :  { %v561_v45 = vrot.slane %v557_v43, 2  ;;  %v1124_v46 = vrot.slane %v557_v43, 10 }
 0x8da   :  { %v562_v47 = vsel %vm215_vm9, %v561_v45, %v560_v44  ;;  %v1503_v40 = vsel %vm215_vm9, %v1124_v46, %v560_v44 }
 0x8db   :  { %563 = vrot.lane.b32.xlu0 %v562_v47, %s1377_s3 }
 0x94d   :  { %v564_v48 = vpop.permute.xlu0 %563 }
 0x94e   :  { %1110 = vmatmul.msk.f32.vlgmr.msrb.gmra.mxu2 %vm79_vm0, %v564_v48 }
 0x9d1   :  { %v584_v49 = vpop.f32.mrf.mxu2 }
 0x9d2   :  { %v588_v50 = vrot.slane %v584_v49, 4  ;;  %v589_v52 = vrot.slane %v584_v49, 5 }
 0x9d4   :  { %v592_v53 = vadd.f32 %v588_v50, %v1422_v18  ;;  %v593_v54 = vadd.f32 %v589_v52, %v1419_v16 }
 0x9d6   :  { %1204 = vtanh.f32 %v592_v53  ;;  %v1112_v58 = vmul.f32 -1.442695, %v593_v54  ;;  %v1111_v62 = vmul.f32 -1.442695, %v592_v53 }
 0x9d7   :  { %1206 = vtanh.f32 %v593_v54 }
 0x9d8   :  { %1208 = vpow2.f32 %v1112_v58 }
 0x9dc   :  { %v1205_v55 = vpop.eup %1204 }
 0x9dd   :  { %v1207_v57 = vpop.eup %1206  ;;  %644 = vrot.lane.b32.xlu1 %v1205_v55, %s1376_s5 }
 0x9de   :  { %646 = vrot.lane.b32.xlu2 %v1207_v57, %s1376_s5  ;;  %v1209_v59 = vpop.eup %1208 }
 0x9df   :  { %v601_v60 = vadd.f32 1.0, %v1209_v59 }
 0x9e1   :  { %1210 = vrcp.f32 %v601_v60  ;;  %v628_v5 = vand.u32 2147483648, %v601_v60  ;;  %vm622_vm8 = vweird.f32 %v601_v60  ;;  %v626_v6 = vand.u32 2147483647, %v601_v60 }
 0x9e2   :  { %1212 = vpow2.f32 %v1111_v62 }
 0x9e3   :  { %v629_v8 = vor.u32 1.1754944e-38, %v628_v5  ;;  %vm627_vm12 = vcmp.eq.f32.partialorder %v626_v6, 8.507059e+37 }
 0x9e7   :  { %v1211_v61 = vpop.eup %1210 }
 0x9e8   :  { %v618_v63 = vmul.f32 %v1211_v61, %v601_v60  ;;  %v1213_v1 = vpop.eup %1212  ;;  %vm623_vm7 = vweird.f32 %v1211_v61 }
 0x9e9   :  { %v600_v3 = vadd.f32 1.0, %v1213_v1  ;;  %vm624_vm11 = vmor %vm622_vm8, %vm623_vm7 }
 0x9ea   :  { %v619_v0 = vsub.f32 1.0, %v618_v63 }
 0x9eb   :  { %1214 = vrcp.f32 %v600_v3  ;;  %v613_v19 = vand.u32 2147483648, %v600_v3  ;;  %vm607_vm14 = vweird.f32 %v600_v3  ;;  %v611_v20 = vand.u32 2147483647, %v600_v3 }
 0x9ec   :  { %v620_v2 = vmul.f32 %v1211_v61, %v619_v0 }
 0x9ed   :  { %v614_v22 = vor.u32 1.1754944e-38, %v613_v19  ;;  %vm612_vm1 = vcmp.eq.f32.partialorder %v611_v20, 8.507059e+37 }
 0x9ee   :  { %v621_v4 = vadd.f32 %v1211_v61, %v620_v2 }
 0x9f0   :  { %v625_v7 = vsel %vm624_vm11, %v1211_v61, %v621_v4 }
 0x9f1   :  { %v630_v10 = vsel %vm627_vm12, %v629_v8, %v625_v7  ;;  %v1215_v11 = vpop.eup %1214 }
 0x9f2   :  { %v603_v13 = vmul.f32 %v1215_v11, %v600_v3  ;;  %vm608_vm13 = vweird.f32 %v1215_v11  ;;  %v641_v27 = vmul.f32 %v637_v26, %v630_v10 }
 0x9f3   :  { %vm609_vm15 = vmor %vm607_vm14, %vm608_vm13 }
 0x9f4   :  { %v604_v14 = vsub.f32 1.0, %v603_v13 }
 0x9f6   :  { %v605_v15 = vmul.f32 %v1215_v11, %v604_v14 }
 0x9f8   :  { %v606_v17 = vadd.f32 %v1215_v11, %v605_v15 }
 0x9fa   :  { %v610_v21 = vsel %vm609_vm15, %v1215_v11, %v606_v17 }
 0x9fb   :  { %v615_v24 = vsel %vm612_vm1, %v614_v22, %v610_v21 }
 0x9fc   :  { %v640_v33 = vmul.f32 %v636_v31, %v615_v24 }
 0xa38   :  { %v647_v9 = vpop.permute.xlu2 %646 }
 0xa39   :  { %v651_v12 = vmul.f32 %v647_v9, %v630_v10 }
 0xa3b   :  { %656 = vrot.lane.b32.xlu1 %v651_v12, %s1377_s3 }
 0xa4f   :  { %v645_v23 = vpop.permute.xlu1 %644 }
 0xa50   :  { %v650_v25 = vmul.f32 %v645_v23, %v615_v24 }
 0xa52   :  { %654 = vrot.lane.b32.xlu0 %v650_v25, %s1377_s3 }
 0xaad   :  { %v657_v28 = vpop.permute.xlu1 %656 }
 0xaae   :  { %v1514_v29 = vadd.f32 %v657_v28, %v641_v27 }
 0xab0   :  { %1216 = vtanh.f32 %v1514_v29  ;;  %v753_v25 = vrot.slane %v1514_v29, 7 }
 0xab6   :  { %v1217_v30 = vpop.eup %1216 }
 0xab7   :  { %668 = vrot.lane.b32.xlu0 %v1217_v30, %s1376_s5 }
 0xac4   :  { %v655_v34 = vpop.permute.xlu0 %654 }
 0xac5   :  { %v1519_v35 = vadd.f32 %v655_v34, %v640_v33 }
 0xac7   :  { %1218 = vtanh.f32 %v1519_v35 }
 0xacd   :  { %v1219_v36 = vpop.eup %1218 }
 0xace   :  { %666 = vrot.lane.b32.xlu2 %v1219_v36, %s1376_s5 }
 0xb28   :  { %v667_v37 = vpop.permute.xlu2 %666 }
 0xb29   :  { %v669_v38 = vpop.permute.xlu0 %668  ;;  %v672_v39 = vmul.f32 %v667_v37, %v615_v24  ;;  %v752_v24 = vrot.slane %v1519_v35, 7 }
 0xb2a   :  { %v673_v41 = vmul.f32 %v669_v38, %v630_v10 }
 0xb2b   :  { %v676_v42 = vrot.slane %v672_v39, 4 }
 0xb2c   :  { %v677_v43 = vrot.slane %v673_v41, 3  ;;  %v1125_v44 = vrot.slane %v673_v41, 11 }
 0xb2e   :  { %v678_v45 = vsel %vm215_vm9, %v677_v43, %v676_v42  ;;  %v1525_v32 = vsel %vm215_vm9, %v1125_v44, %v676_v42 }
 0xb2f   :  { %679 = vrot.lane.b32.xlu1 %v678_v45, %s1377_s3 }
 0xba1   :  { %v680_v46 = vpop.permute.xlu1 %679 }
 0xba2   :  { %1113 = vmatmul.msk.f32.vlgmr.msrb.gmra.mxu3 %vm79_vm0, %v680_v46 }
 0xc25   :  { %v700_v47 = vpop.f32.mrf.mxu3 }
 0xc26   :  { %v704_v48 = vrot.slane %v700_v47, 3  ;;  %v705_v49 = vrot.slane %v700_v47, 4 }
 0xc28   :  { %v708_v50 = vadd.f32 %v704_v48, %v1422_v18  ;;  %v709_v52 = vadd.f32 %v705_v49, %v1419_v16 }
 0xc2a   :  { %1220 = vtanh.f32 %v708_v50  ;;  %v1114_v55 = vmul.f32 -1.442695, %v708_v50  ;;  %v1115_v60 = vmul.f32 -1.442695, %v709_v52 }
 0xc2b   :  { %1222 = vtanh.f32 %v709_v52 }
 0xc2c   :  { %1224 = vpow2.f32 %v1114_v55 }
 0xc30   :  { %v1221_v53 = vpop.eup %1220 }
 0xc31   :  { %v1223_v54 = vpop.eup %1222  ;;  %760 = vrot.lane.b32.xlu2 %v1221_v53, %s1376_s5 }
 0xc32   :  { %762 = vrot.lane.b32.xlu0 %v1223_v54, %s1376_s5  ;;  %v1225_v57 = vpop.eup %1224 }
 0xc33   :  { %v716_v58 = vadd.f32 1.0, %v1225_v57 }
 0xc35   :  { %1226 = vrcp.f32 %v716_v58  ;;  %v729_v3 = vand.u32 2147483648, %v716_v58  ;;  %vm723_vm3 = vweird.f32 %v716_v58  ;;  %v727_v4 = vand.u32 2147483647, %v716_v58 }
 0xc36   :  { %1228 = vpow2.f32 %v1115_v60 }
 0xc37   :  { %v730_v6 = vor.u32 1.1754944e-38, %v729_v3  ;;  %vm728_vm5 = vcmp.eq.f32.partialorder %v727_v4, 8.507059e+37 }
 0xc3b   :  { %v1227_v59 = vpop.eup %1226 }
 0xc3c   :  { %v719_v61 = vmul.f32 %v1227_v59, %v716_v58  ;;  %v1229_v0 = vpop.eup %1228  ;;  %vm724_vm2 = vweird.f32 %v1227_v59 }
 0xc3d   :  { %v717_v1 = vadd.f32 1.0, %v1229_v0  ;;  %vm725_vm4 = vmor %vm723_vm3, %vm724_vm2 }
 0xc3e   :  { %v720_v62 = vsub.f32 1.0, %v719_v61 }
 0xc3f   :  { %1230 = vrcp.f32 %v717_v1  ;;  %v744_v15 = vand.u32 2147483648, %v717_v1  ;;  %vm738_vm7 = vweird.f32 %v717_v1  ;;  %v742_v17 = vand.u32 2147483647, %v717_v1 }
 0xc40   :  { %v721_v63 = vmul.f32 %v1227_v59, %v720_v62 }
 0xc41   :  { %v745_v20 = vor.u32 1.1754944e-38, %v744_v15  ;;  %vm743_vm11 = vcmp.eq.f32.partialorder %v742_v17, 8.507059e+37 }
 0xc42   :  { %v722_v2 = vadd.f32 %v1227_v59, %v721_v63 }
 0xc44   :  { %v726_v5 = vsel %vm725_vm4, %v1227_v59, %v722_v2 }
 0xc45   :  { %v731_v8 = vsel %vm728_vm5, %v730_v6, %v726_v5  ;;  %v1231_v10 = vpop.eup %1230 }
 0xc46   :  { %v734_v11 = vmul.f32 %v1231_v10, %v717_v1  ;;  %vm739_vm6 = vweird.f32 %v1231_v10  ;;  %v756_v26 = vmul.f32 %v752_v24, %v731_v8 }
 0xc47   :  { %vm740_vm8 = vmor %vm738_vm7, %vm739_vm6 }
 0xc48   :  { %v735_v12 = vsub.f32 1.0, %v734_v11 }
 0xc4a   :  { %v736_v13 = vmul.f32 %v1231_v10, %v735_v12 }
 0xc4c   :  { %v737_v14 = vadd.f32 %v1231_v10, %v736_v13 }
 0xc4e   :  { %v741_v19 = vsel %vm740_vm8, %v1231_v10, %v737_v14 }
 0xc4f   :  { %v746_v22 = vsel %vm743_vm11, %v745_v20, %v741_v19 }
 0xc50   :  { %v757_v27 = vmul.f32 %v753_v25, %v746_v22 }
 0xc8b   :  { %v761_v7 = vpop.permute.xlu2 %760 }
 0xc8c   :  { %v766_v9 = vmul.f32 %v761_v7, %v731_v8 }
 0xc8e   :  { %770 = vrot.lane.b32.xlu1 %v766_v9, %s1377_s3 }
 0xca4   :  { %v763_v21 = vpop.permute.xlu0 %762 }
 0xca5   :  { %v767_v23 = vmul.f32 %v763_v21, %v746_v22 }
 0xca7   :  { %772 = vrot.lane.b32.xlu2 %v767_v23, %s1377_s3 }
 0xd00   :  { %v771_v28 = vpop.permute.xlu1 %770 }
 0xd01   :  { %v773_v30 = vpop.permute.xlu2 %772  ;;  %v1537_v31 = vadd.f32 %v771_v28, %v756_v26 }
 0xd02   :  { %v1539_v33 = vadd.f32 %v773_v30, %v757_v27 }
 0xd03   :  { %1232 = vtanh.f32 %v1537_v31  ;;  %v868_v23 = vrot.slane %v1537_v31, 7 }
 0xd04   :  { %1234 = vtanh.f32 %v1539_v33  ;;  %v869_v28 = vrot.slane %v1539_v33, 7 }
 0xd09   :  { %v1233_v34 = vpop.eup %1232 }
 0xd0a   :  { %v1235_v36 = vpop.eup %1234  ;;  %782 = vrot.lane.b32.xlu0 %v1233_v34, %s1376_s5 }
 0xd0b   :  { %784 = vrot.lane.b32.xlu1 %v1235_v36, %s1376_s5 }
 0xd7c   :  { %v783_v35 = vpop.permute.xlu0 %782 }
 0xd7d   :  { %v785_v29 = vpop.permute.xlu1 %784  ;;  %v788_v37 = vmul.f32 %v783_v35, %v731_v8 }
 0xd7e   :  { %v789_v38 = vmul.f32 %v785_v29, %v746_v22 }
 0xd7f   :  { %v792_v39 = vrot.slane %v788_v37, 5 }
 0xd80   :  { %v793_v41 = vrot.slane %v789_v38, 4  ;;  %v1126_v42 = vrot.slane %v789_v38, 12 }
 0xd82   :  { %v794_v43 = vsel %vm215_vm9, %v793_v41, %v792_v39  ;;  %v1547_v44 = vsel %vm215_vm9, %v1126_v42, %v792_v39 }
 0xd83   :  { %795 = vrot.lane.b32.xlu2 %v794_v43, %s1377_s3 }
 0xddd   :  { %v796_v45 = vpop.permute.xlu2 %795 }
 0xdde   :  { %1116 = vmatmul.msk.f32.vlgmr.msrb.gmra.mxu0 %vm79_vm0, %v796_v45 }
 0xe5b   :  { %v816_v46 = vpop.f32.mrf.mxu0 }
 0xe5c   :  { %v820_v47 = vrot.slane %v816_v46, 2  ;;  %v821_v48 = vrot.slane %v816_v46, 3 }
 0xe5e   :  { %v824_v49 = vadd.f32 %v820_v47, %v1422_v18  ;;  %v825_v50 = vadd.f32 %v821_v48, %v1419_v16 }
 0xe60   :  { %1236 = vtanh.f32 %v824_v49  ;;  %v1117_v54 = vmul.f32 -1.442695, %v824_v49  ;;  %v1118_v55 = vmul.f32 -1.442695, %v825_v50 }
 0xe61   :  { %1238 = vtanh.f32 %v825_v50 }
 0xe62   :  { %1240 = vpow2.f32 %v1117_v54 }
 0xe63   :  { %1242 = vpow2.f32 %v1118_v55 }
 0xe66   :  { %v1237_v52 = vpop.eup %1236 }
 0xe67   :  { %v1239_v53 = vpop.eup %1238  ;;  %876 = vrot.lane.b32.xlu0 %v1237_v52, %s1376_s5 }
 0xe68   :  { %878 = vrot.lane.b32.xlu1 %v1239_v53, %s1376_s5  ;;  %v1241_v57 = vpop.eup %1240 }
 0xe69   :  { %v1243_v58 = vpop.eup %1242  ;;  %v832_v59 = vadd.f32 1.0, %v1241_v57 }
 0xe6a   :  { %v833_v60 = vadd.f32 1.0, %v1243_v58 }
 0xe6b   :  { %1244 = vrcp.f32 %v832_v59  ;;  %v845_v7 = vand.u32 2147483648, %v832_v59  ;;  %vm839_vm14 = vweird.f32 %v832_v59  ;;  %v843_v9 = vand.u32 2147483647, %v832_v59 }
 0xe6c   :  { %1246 = vrcp.f32 %v833_v60  ;;  %v860_v8 = vand.u32 2147483648, %v833_v60  ;;  %vm854_vm15 = vweird.f32 %v833_v60  ;;  %v858_v10 = vand.u32 2147483647, %v833_v60 }
 0xe6d   :  { %v846_v13 = vor.u32 1.1754944e-38, %v845_v7  ;;  %vm844_vm3 = vcmp.eq.f32.partialorder %v843_v9, 8.507059e+37 }
 0xe6e   :  { %v861_v14 = vor.u32 1.1754944e-38, %v860_v8  ;;  %vm859_vm4 = vcmp.eq.f32.partialorder %v858_v10, 8.507059e+37 }
 0xe71   :  { %v1245_v61 = vpop.eup %1244 }
 0xe72   :  { %v1247_v62 = vpop.eup %1246  ;;  %v835_v63 = vmul.f32 %v1245_v61, %v832_v59  ;;  %vm840_vm12 = vweird.f32 %v1245_v61 }
 0xe73   :  { %v850_v0 = vmul.f32 %v1247_v62, %v833_v60  ;;  %vm855_vm13 = vweird.f32 %v1247_v62  ;;  %vm841_vm1 = vmor %vm839_vm14, %vm840_vm12 }
 0xe74   :  { %v836_v1 = vsub.f32 1.0, %v835_v63  ;;  %vm856_vm2 = vmor %vm854_vm15, %vm855_vm13 }
 0xe75   :  { %v851_v2 = vsub.f32 1.0, %v850_v0 }
 0xe76   :  { %v837_v3 = vmul.f32 %v1245_v61, %v836_v1 }
 0xe77   :  { %v852_v4 = vmul.f32 %v1247_v62, %v851_v2 }
 0xe78   :  { %v838_v5 = vadd.f32 %v1245_v61, %v837_v3 }
 0xe79   :  { %v853_v6 = vadd.f32 %v1247_v62, %v852_v4 }
 0xe7a   :  { %v842_v11 = vsel %vm841_vm1, %v1245_v61, %v838_v5 }
 0xe7b   :  { %v857_v12 = vsel %vm856_vm2, %v1247_v62, %v853_v6  ;;  %v847_v17 = vsel %vm844_vm3, %v846_v13, %v842_v11 }
 0xe7c   :  { %v862_v20 = vsel %vm859_vm4, %v861_v14, %v857_v12  ;;  %v872_v24 = vmul.f32 %v868_v23, %v847_v17 }
 0xe7d   :  { %v873_v30 = vmul.f32 %v869_v28, %v862_v20 }
 0xed9   :  { %v877_v15 = vpop.permute.xlu0 %876 }
 0xeda   :  { %v879_v19 = vpop.permute.xlu1 %878  ;;  %v882_v21 = vmul.f32 %v877_v15, %v847_v17 }
 0xedb   :  { %v883_v22 = vmul.f32 %v879_v19, %v862_v20 }
 0xedc   :  { %886 = vrot.lane.b32.xlu2 %v882_v21, %s1377_s3 }
 0xedd   :  { %888 = vrot.lane.b32.xlu0 %v883_v22, %s1377_s3 }
 0xf36   :  { %v887_v25 = vpop.permute.xlu2 %886 }
 0xf37   :  { %v1558_v26 = vadd.f32 %v887_v25, %v872_v24 }
 0xf39   :  { %1248 = vtanh.f32 %v1558_v26 }
 0xf3f   :  { %v1249_v27 = vpop.eup %1248 }
 0xf40   :  { %898 = vrot.lane.b32.xlu1 %v1249_v27, %s1376_s5  ;;  %v984_v27 = vrot.slane %v1558_v26, 7 }
 0xf4f   :  { %v889_v34 = vpop.permute.xlu0 %888 }
 0xf50   :  { %v1563_v36 = vadd.f32 %v889_v34, %v873_v30 }
 0xf52   :  { %1250 = vtanh.f32 %v1563_v36 }
 0xf58   :  { %v1251_v35 = vpop.eup %1250 }
 0xf59   :  { %900 = vrot.lane.b32.xlu2 %v1251_v35, %s1376_s5 }
 0xfb2   :  { %v899_v31 = vpop.permute.xlu1 %898 }
 0xfb3   :  { %v901_v29 = vpop.permute.xlu2 %900  ;;  %v904_v37 = vmul.f32 %v899_v31, %v847_v17 }
 0xfb4   :  { %v905_v38 = vmul.f32 %v901_v29, %v862_v20 }
 0xfb5   :  { %v908_v39 = vrot.slane %v904_v37, 6 }
 0xfb6   :  { %v909_v41 = vrot.slane %v905_v38, 5  ;;  %v1127_v42 = vrot.slane %v905_v38, 13 }
 0xfb8   :  { %v910_v43 = vsel %vm215_vm9, %v909_v41, %v908_v39  ;;  %v1569_v33 = vsel %vm215_vm9, %v1127_v42, %v908_v39 }
 0xfb9   :  { %911 = vrot.lane.b32.xlu0 %v910_v43, %s1377_s3 }
0x102b   :  { %v912_v45 = vpop.permute.xlu0 %911 }
0x102c   :  { %1119 = vmatmul.msk.f32.vlgmr.msra.gmra.mxu1 %vm79_vm0, %v912_v45 }
0x10a9   :  { %v932_v46 = vpop.f32.mrf.mxu1 }
0x10aa   :  { %v936_v47 = vrot.slane %v932_v46, 1  ;;  %v937_v48 = vrot.slane %v932_v46, 2 }
0x10ac   :  { %v940_v49 = vadd.f32 %v936_v47, %v1422_v18  ;;  %v941_v50 = vadd.f32 %v937_v48, %v1419_v16 }
0x10ae   :  { %1252 = vtanh.f32 %v940_v49  ;;  %v1121_v54 = vmul.f32 -1.442695, %v941_v50  ;;  %v1120_v59 = vmul.f32 -1.442695, %v940_v49 }
0x10af   :  { %1254 = vtanh.f32 %v941_v50 }
0x10b0   :  { %1256 = vpow2.f32 %v1121_v54 }
0x10b4   :  { %v1253_v52 = vpop.eup %1252 }
0x10b5   :  { %v1255_v53 = vpop.eup %1254  ;;  %992 = vrot.lane.b32.xlu1 %v1253_v52, %s1376_s5 }
0x10b6   :  { %994 = vrot.lane.b32.xlu2 %v1255_v53, %s1376_s5  ;;  %v1257_v55 = vpop.eup %1256 }
0x10b7   :  { %v949_v57 = vadd.f32 1.0, %v1257_v55 }
0x10b9   :  { %1258 = vrcp.f32 %v949_v57  ;;  %v976_v0 = vand.u32 2147483648, %v949_v57  ;;  %vm970_vm5 = vweird.f32 %v949_v57  ;;  %v974_v1 = vand.u32 2147483647, %v949_v57 }
0x10ba   :  { %1260 = vpow2.f32 %v1120_v59 }
0x10bb   :  { %v977_v3 = vor.u32 1.1754944e-38, %v976_v0  ;;  %vm975_vm7 = vcmp.eq.f32.partialorder %v974_v1, 8.507059e+37 }
0x10bf   :  { %v1259_v58 = vpop.eup %1258 }
0x10c0   :  { %v966_v60 = vmul.f32 %v1259_v58, %v949_v57  ;;  %v1261_v61 = vpop.eup %1260  ;;  %vm971_vm0 = vweird.f32 %v1259_v58 }
0x10c1   :  { %v948_v62 = vadd.f32 1.0, %v1261_v61  ;;  %vm972_vm6 = vmor %vm970_vm5, %vm971_vm0 }
0x10c2   :  { %v967_v18 = vsub.f32 1.0, %v966_v60 }
0x10c3   :  { %1262 = vrcp.f32 %v948_v62  ;;  %v961_v12 = vand.u32 2147483648, %v948_v62  ;;  %vm955_vm11 = vweird.f32 %v948_v62  ;;  %v959_v13 = vand.u32 2147483647, %v948_v62 }
0x10c4   :  { %v968_v16 = vmul.f32 %v1259_v58, %v967_v18 }
0x10c5   :  { %v962_v15 = vor.u32 1.1754944e-38, %v961_v12  ;;  %vm960_vm13 = vcmp.eq.f32.partialorder %v959_v13, 8.507059e+37 }
0x10c6   :  { %v969_v63 = vadd.f32 %v1259_v58, %v968_v16 }
0x10c8   :  { %v973_v2 = vsel %vm972_vm6, %v1259_v58, %v969_v63 }
0x10c9   :  { %v978_v5 = vsel %vm975_vm7, %v977_v3, %v973_v2  ;;  %v1263_v6 = vpop.eup %1262 }
0x10ca   :  { %v951_v8 = vmul.f32 %v1263_v6, %v948_v62  ;;  %vm956_vm8 = vweird.f32 %v1263_v6 }
0x10cb   :  { %vm957_vm12 = vmor %vm955_vm11, %vm956_vm8 }
0x10cc   :  { %v952_v9 = vsub.f32 1.0, %v951_v8 }
0x10ce   :  { %v953_v10 = vmul.f32 %v1263_v6, %v952_v9 }
0x10d0   :  { %v954_v11 = vadd.f32 %v1263_v6, %v953_v10 }
0x10d2   :  { %v958_v14 = vsel %vm957_vm12, %v1263_v6, %v954_v11 }
0x10d3   :  { %v963_v19 = vsel %vm960_vm13, %v962_v15, %v958_v14 }
0x10d4   :  { %v988_v28 = vmul.f32 %v984_v27, %v963_v19 }
0x1110   :  { %v995_v4 = vpop.permute.xlu2 %994 }
0x1111   :  { %v999_v7 = vmul.f32 %v995_v4, %v978_v5 }
0x1113   :  { %1004 = vrot.lane.b32.xlu1 %v999_v7, %s1377_s3 }
0x111b   :  { %1046 = vrot.lane.b32.xlu1 %v1458_v56, %s1377_s3  ;;  %v985_v56 = vrot.slane %v1563_v36, 7 }
0x111d   :  { %v989_v21 = vmul.f32 %v985_v56, %v978_v5 }
0x1123   :  { %1052 = vrot.lane.b32.xlu1 %v1525_v32, %s1377_s3 }
0x1127   :  { %v993_v17 = vpop.permute.xlu1 %992 }
0x1128   :  { %v998_v20 = vmul.f32 %v993_v17, %v963_v19 }
0x112a   :  { %1002 = vrot.lane.b32.xlu0 %v998_v20, %s1377_s3 }
0x1185   :  { %v1005_v22 = vpop.permute.xlu1 %1004 }
0x1186   :  { %v1009_v23 = vadd.f32 %v1005_v22, %v989_v21 }
0x1188   :  { %1264 = vtanh.f32 %v1009_v23 }
0x118d   :  { %v1047_v24 = vpop.permute.xlu1 %1046 }
0x118e   :  { %v1265_v25 = vpop.eup %1264  ;;  %1070 = vst.msk [vmem:[#allocation8 + $0x2] sm:$0x3] %vm1068_vm10, %v1047_v24 }
0x118f   :  { %1016 = vrot.lane.b32.xlu0 %v1265_v25, %s1376_s5 }
0x1195   :  { %v1053_v32 = vpop.permute.xlu1 %1052 }
0x1196   :  { %1073 = vst.msk [vmem:[#allocation8 + $0x8] sm:$0x3] %vm1068_vm10, %v1053_v32 }
0x1197   :  { %1050 = vrot.lane.b32.xlu0 %v1503_v40, %s1377_s3 }
0x119c   :  { %v1003_v30 = vpop.permute.xlu0 %1002 }
0x119d   :  { %v1008_v34 = vadd.f32 %v1003_v30, %v988_v28 }
0x119f   :  { %1266 = vtanh.f32 %v1008_v34  ;;  %1056 = vrot.lane.b32.xlu0 %v1569_v33, %s1377_s3 }
0x11a5   :  { %v1267_v36 = vpop.eup %1266 }
0x11a6   :  { %1014 = vrot.lane.b32.xlu2 %v1267_v36, %s1376_s5 }
0x11ae   :  { %1048 = vrot.lane.b32.xlu2 %v1481_v51, %s1377_s3 }
0x11b6   :  { %1054 = vrot.lane.b32.xlu2 %v1547_v44, %s1377_s3 }
0x1200   :  { %v1015_v35 = vpop.permute.xlu2 %1014 }
0x1201   :  { %v1017_v40 = vpop.permute.xlu0 %1016  ;;  %v1020_v31 = vmul.f32 %v1015_v35, %v963_v19 }
0x1202   :  { %v1021_v26 = vmul.f32 %v1017_v40, %v978_v5 }
0x1203   :  { %v1030_v29 = vrot.slane %v1020_v31, 7 }
0x1204   :  { %v1128_v37 = vrot.slane %v1021_v26, 14 }
0x1206   :  { %v1045_v38 = vsel %vm215_vm9, %v1128_v37, %v1030_v29 }
0x1207   :  { %1058 = vrot.lane.b32.xlu1 %v1045_v38, %s1377_s3 }
0x1208   :  { %v1049_v39 = vpop.permute.xlu2 %1048 }
0x1209   :  { %v1051_v41 = vpop.permute.xlu0 %1050  ;;  %1071 = vst.msk [vmem:[#allocation8 + $0x4] sm:$0x3] %vm1068_vm10, %v1049_v39 }
0x120a   :  { %1072 = vst.msk [vmem:[#allocation8 + $0x6] sm:$0x3] %vm1068_vm10, %v1051_v41 }
0x1210   :  { %v1055_v51 = vpop.permute.xlu2 %1054 }
0x1211   :  { %v1057_v42 = vpop.permute.xlu0 %1056  ;;  %1074 = vst.msk [vmem:[#allocation8 + $0xa] sm:$0x3] %vm1068_vm10, %v1055_v51 }
0x1212   :  { %1075 = vst.msk [vmem:[#allocation8 + $0xc] sm:$0x3] %vm1068_vm10, %v1057_v42 }
0x1279   :  { %v1059_v44 = vpop.permute.xlu1 %1058 }
0x127a   :  { %1076 = vst.msk [vmem:[#allocation8 + $0xe] sm:$0x3] %vm1068_vm10, %v1059_v44 }
0x127b   :  { %1089 = dma.vmem_to_hbm [thread:$0]  %s1082_s7, 256, %s1084_s10, [#allocation4], %s1377_s3, %s1377_s3, %s1379_s11  }
0x127c   :  { %1368 = dma.done.wait [#allocation4], 256  }
0x127d   :  { %1369 = vsyncadd [#allocation4], 4294967040 }
0x127e   :  { %1094 = vsyncpa [#allocation3], 1 }
0x127f   :  { %1095 = vsyncpa [#allocation6], 1 }
0x1280   :  { %1096 = vsyncpa [#allocation4], 1 }

</bundles_post_ra>
